<compile_context>
chip_gen: v5e
topology: v5e:2x2
jax: 0.10.0
libtpu: 0.0.40
codegen_flags: <defaults>
</compile_context>

<pallas_src>
import functools

import jax
import jax.numpy as jnp
from jax import lax
from jax.experimental import pallas as pl
from jax.experimental.pallas import tpu as pltpu

NEG_SLOPE = 0.2  # PyG GATConv default LeakyReLU slope


# ----------------------------------------------------------------------------
# In-kernel helpers
# ----------------------------------------------------------------------------
def _elu(v):
    # clamp the exp argument so the unselected branch can't overflow
    return jnp.where(v > 0, v, jnp.exp(jnp.minimum(v, 0.0)) - 1.0)


# ----------------------------------------------------------------------------
# Fused forward kernel (single pallas_call, no grid - everything in VMEM)
# ----------------------------------------------------------------------------
def _fused_forward_kernel(x_ref, m1_ref, m3_ref, *refs, index):
    slab_refs, out_ref = refs[:-1], refs[-1]

    def view(name):
        s, o, r = index[name]          # static python ints -> zero-cost view
        return slab_refs[s][o:o + r, :]

    def gat(x_in, mask_t, w, st, dexp, bias, e_head, t_t, seg, t_mat, bm,
            avg=None):
        # projected features, heads concatenated along lanes          [N, H*C]
        h_all = jnp.dot(x_in, w, preferred_element_type=jnp.float32)
        # dst coefficient expanded straight to the logit slab         [N, H*N]
        e_dst = jnp.dot(h_all, dexp, preferred_element_type=jnp.float32)
        # src coefficient: [H,N] -> tile along lanes -> head-mask -> row vec
        a_srcT = lax.dot_general(st, h_all, (((1,), (1,)), ((), ())),
                                 preferred_element_type=jnp.float32)   # [H, N]
        srcw = jnp.dot(a_srcT, t_t, preferred_element_type=jnp.float32)  # [H, H*N]
        vec = jnp.sum(srcw * e_head, axis=0, keepdims=True)            # [1, H*N]
        e = e_dst + vec                                                 # [N, H*N]
        # LeakyReLU + adjacency mask (one lane-dense slab per layer)
        e = jnp.maximum(e, NEG_SLOPE * e) + mask_t
        # global per-row max is a valid softmax shift; denom is clamped below
        e = e - jnp.max(e, axis=-1, keepdims=True)
        p = jnp.exp(e)
        # per-head segment sums on the MXU (block-ones matrix)
        denom = jnp.dot(p, seg, preferred_element_type=jnp.float32)     # [N, H*N]
        alpha = p * pl.reciprocal(jnp.maximum(denom, 1e-30), approx=True)
        # block-diagonalised features -> one-shot aggregation for all heads
        hbd = jnp.dot(t_mat, h_all, preferred_element_type=jnp.float32) * bm
        y = jnp.dot(alpha, hbd, preferred_element_type=jnp.float32)     # [N, H*C]
        if avg is not None:                                             # head mean
            y = jnp.dot(y, avg, preferred_element_type=jnp.float32)     # [N, C]
        return y + bias

    x = x_ref[...]
    mask1 = m1_ref[...]
    mask3 = m3_ref[...]

    # structural constants shared by layers 1 & 2 (loaded once)
    eh1, tt1, seg1, t1, bm1 = (view("e_head1"), view("t_t1"), view("seg1"),
                               view("t1"), view("bm1"))

    # block 1: x <- elu(gat1(x)) + proj1(x)          (dropout = identity, eval)
    ident1 = jnp.dot(x, view("p1w"), preferred_element_type=jnp.float32) + view("p1b")
    g1 = gat(x, mask1, view("w1"), view("s1t"), view("dexp1"), view("b1"),
             eh1, tt1, seg1, t1, bm1)
    x1 = _elu(g1) + ident1

    # block 2: x <- elu(gat2(x)) + x                  (proj2 = Identity)
    g2 = gat(x1, mask1, view("w2"), view("s2t"), view("dexp2"), view("b2"),
             eh1, tt1, seg1, t1, bm1)
    x2 = _elu(g2) + x1

    # block 3: out <- gat3(x) + proj3(x)              (head mean, no ELU)
    ident3 = jnp.dot(x2, view("p3w"), preferred_element_type=jnp.float32) + view("p3b")
    g3 = gat(x2, mask3, view("w3"), view("s3t"), view("dexp3"), view("b3"),
             view("e_head3"), view("t_t3"), view("seg3"), view("t3"), view("bm3"),
             avg=view("avg3"))
    out_ref[...] = g3 + ident3


def make_forward(index, out_size):
    kernel = functools.partial(_fused_forward_kernel, index=index)

    def forward(x, mask_t1, mask_t3, *slabs):
        n = x.shape[0]
        vmem = pl.BlockSpec(memory_space=pltpu.MemorySpace.VMEM)
        return pl.pallas_call(
            kernel,
            out_shape=jax.ShapeDtypeStruct((n, out_size), jnp.float32),
            in_specs=[vmem] * (3 + len(slabs)),
            out_specs=vmem,
            cost_estimate=pl.CostEstimate(
                flops=10_000_000, transcendentals=20_000,
                bytes_accessed=900_000),
        )(x, mask_t1, mask_t3, *slabs)

    return forward


# ----------------------------------------------------------------------------
# Host-side parameter construction + packing (done once)
# ----------------------------------------------------------------------------
def _xavier(key, shape, fan_in, fan_out):
    std = (2.0 / (fan_in + fan_out)) ** 0.5
    return std * jax.random.normal(key, shape, dtype=jnp.float32)


def init_params(key, input_size, hidden_size, output_size, heads_1, heads_2):
    """Head-major raw parameters, mirroring PyG GATConv parameter shapes."""
    ks = jax.random.split(key, 16)
    hh = hidden_size * heads_1
    raw = {}
    # GATConv1: in=input_size, out=hidden_size, heads=heads_1 (concat)
    raw["w1"] = _xavier(ks[0], (heads_1, input_size, hidden_size),
                        input_size, heads_1 * hidden_size)
    raw["asrc1"] = _xavier(ks[1], (heads_1, hidden_size), hidden_size, 1)
    raw["adst1"] = _xavier(ks[2], (heads_1, hidden_size), hidden_size, 1)
    raw["b1"] = jnp.zeros((heads_1 * hidden_size,), jnp.float32)
    # GATConv2: in=hidden*heads_1, out=hidden, heads=heads_1 (concat)
    raw["w2"] = _xavier(ks[3], (heads_1, hh, hidden_size), hh, heads_1 * hidden_size)
    raw["asrc2"] = _xavier(ks[4], (heads_1, hidden_size), hidden_size, 1)
    raw["adst2"] = _xavier(ks[5], (heads_1, hidden_size), hidden_size, 1)
    raw["b2"] = jnp.zeros((heads_1 * hidden_size,), jnp.float32)
    # GATConv3: in=hidden*heads_1, out=output_size, heads=heads_2 (mean)
    raw["w3"] = _xavier(ks[6], (heads_2, hh, output_size), hh, heads_2 * output_size)
    raw["asrc3"] = _xavier(ks[7], (heads_2, output_size), output_size, 1)
    raw["adst3"] = _xavier(ks[8], (heads_2, output_size), output_size, 1)
    raw["b3"] = jnp.zeros((output_size,), jnp.float32)
    # proj1: Linear(input_size, hidden*heads_1)
    raw["p1w"] = _xavier(ks[9], (input_size, hh), input_size, hh)
    raw["p1b"] = jnp.zeros((hh,), jnp.float32)
    # proj3: Linear(hidden*heads_1, output_size)
    raw["p3w"] = _xavier(ks[10], (hh, output_size), hh, output_size)
    raw["p3b"] = jnp.zeros((output_size,), jnp.float32)
    return raw


def _pack_by_width(named_arrays):
    """Group 2-D arrays by lane width into a few contiguous slabs.

    Each entry is padded to a multiple of 8 rows so every in-kernel view is a
    sublane-aligned static slice.  Returns (slabs, index) where
    index[name] = (slab_idx, row_offset, rows).
    """
    by_w = {}
    for name, arr in named_arrays:
        assert arr.ndim == 2
        by_w.setdefault(int(arr.shape[1]), []).append((name, arr))
    slabs, index = [], {}
    for w in sorted(by_w):
        parts, row = [], 0
        for name, arr in by_w[w]:
            r = int(arr.shape[0])
            index[name] = (len(slabs), row, r)
            pad = (-r) % 8
            if pad:
                arr = jnp.concatenate([arr, jnp.zeros((pad, w), arr.dtype)], axis=0)
            parts.append(arr)
            row += r + pad
        slabs.append(jnp.concatenate(parts, axis=0))
    return slabs, index


def pack_params(raw, num_nodes):
    """Pack weights + structural expansion matrices into width-grouped slabs."""
    n = num_nodes
    h1, _, c1 = raw["w1"].shape
    h2, _, c2 = raw["w3"].shape

    def w_cat(w):          # [H, Fin, C] -> [Fin, H*C] (heads along lanes)
        hh, f, c = w.shape
        return jnp.transpose(w, (1, 0, 2)).reshape(f, hh * c)

    def s_t(att):          # [H, C] -> [H, H*C] block-diagonal att_src
        h, c = att.shape
        col_head = jnp.arange(h * c) // c
        return ((jnp.arange(h)[:, None] == col_head[None, :]).astype(jnp.float32)
                * att.reshape(1, h * c))

    def d_exp(att):        # [H, C] -> [H*C, H*N] att_dst expansion to logit slab
        h, c = att.shape
        feat_head = jnp.arange(h * c) // c
        logit_head = jnp.arange(h * n) // n
        return (att.reshape(h * c, 1)
                * (feat_head[:, None] == logit_head[None, :]).astype(jnp.float32))

    def structural(h, c):  # constants depending only on (N, H, C)
        hn, hc = h * n, h * c
        qh = jnp.arange(hn) // n          # head of logit column
        qj = jnp.arange(hn) % n           # source node of logit column
        kh = jnp.arange(hc) // c          # head of feature column
        e_head = (jnp.arange(h)[:, None] == qh[None, :]).astype(jnp.float32)  # [H, HN]
        t_t = (jnp.arange(n)[:, None] == qj[None, :]).astype(jnp.float32)     # [N, HN]
        seg = (qh[:, None] == qh[None, :]).astype(jnp.float32)                # [HN, HN]
        t_mat = (qj[:, None] == jnp.arange(n)[None, :]).astype(jnp.float32)   # [HN, N]
        bm = (qh[:, None] == kh[None, :]).astype(jnp.float32)                 # [HN, HC]
        return e_head, t_t, seg, t_mat, bm

    eh1, tt1, seg1, t1, bm1 = structural(h1, c1)
    eh3, tt3, seg3, t3, bm3 = structural(h2, c2)
    avg3 = ((jnp.arange(h2 * c2) % c2)[:, None] == jnp.arange(c2)[None, :]
            ).astype(jnp.float32) / h2                                         # [H*C, C]

    named = [
        # layer 1
        ("w1", w_cat(raw["w1"])), ("s1t", s_t(raw["asrc1"])),
        ("dexp1", d_exp(raw["adst1"])), ("b1", raw["b1"][None, :]),
        # layer 2
        ("w2", w_cat(raw["w2"])), ("s2t", s_t(raw["asrc2"])),
        ("dexp2", d_exp(raw["adst2"])), ("b2", raw["b2"][None, :]),
        # layer 3
        ("w3", w_cat(raw["w3"])), ("s3t", s_t(raw["asrc3"])),
        ("dexp3", d_exp(raw["adst3"])), ("b3", raw["b3"][None, :]),
        # residual projections
        ("p1w", raw["p1w"]), ("p1b", raw["p1b"][None, :]),
        ("p3w", raw["p3w"]), ("p3b", raw["p3b"][None, :]),
        # structural constants, layers 1 & 2 (shared)
        ("e_head1", eh1), ("t_t1", tt1), ("seg1", seg1), ("t1", t1), ("bm1", bm1),
        # structural constants, layer 3
        ("e_head3", eh3), ("t_t3", tt3), ("seg3", seg3), ("t3", t3), ("bm3", bm3),
        ("avg3", avg3),
    ]
    slabs, index = _pack_by_width(named)
    return slabs, index, int(c2)


def edge_index_to_mask(edge_index, num_nodes):
    """edge_index: [2, E] (row 0 = source, row 1 = target). Adds self loops."""
    src, dst = edge_index[0], edge_index[1]
    mask = jnp.full((num_nodes, num_nodes), -1e9, dtype=jnp.float32)
    mask = mask.at[dst, src].set(0.0)
    diag = jnp.arange(num_nodes)
    mask = mask.at[diag, diag].set(0.0)   # add_self_loops=True (PyG default)
    return mask


# ----------------------------------------------------------------------------
if __name__ == "__main__":
    N = 16              # number of graph nodes
    E = 40              # number of directed edges
    INPUT_SIZE = 16
    HIDDEN_SIZE = 16
    OUTPUT_SIZE = 16
    HEADS_1 = 8
    HEADS_2 = 10

    root = jax.random.PRNGKey(0)
    k_x, k_src, k_dst, k_par = jax.random.split(root, 4)

    x = jax.random.normal(k_x, (N, INPUT_SIZE), dtype=jnp.float32)
    edge_index = jnp.stack([
        jax.random.randint(k_src, (E,), 0, N),
        jax.random.randint(k_dst, (E,), 0, N),
    ])
    mask = edge_index_to_mask(edge_index, N)
    # head-tiled masks (precomputed once, lane-dense [N, H*N])
    mask_t1 = jnp.tile(mask, (1, HEADS_1))
    mask_t3 = jnp.tile(mask, (1, HEADS_2))

    raw_params = init_params(k_par, INPUT_SIZE, HIDDEN_SIZE, OUTPUT_SIZE,
                             HEADS_1, HEADS_2)
    slabs, index, out_size = pack_params(raw_params, N)
    slabs = [jax.block_until_ready(s) for s in slabs]

    # TODO(synk): dropout layers are identity here (eval mode); training-mode
    # dropout would need pltpu.prng_* inside the kernel.
    forward = jax.jit(make_forward(index, out_size))
    out = forward(x, mask_t1, mask_t3, *slabs)
    out = jax.block_until_ready(out)
    assert out.shape == (N, OUTPUT_SIZE)
    assert bool(jnp.all(jnp.isfinite(out)))
    print("KERNEL_OK")
</pallas_src>

<mosaic_0001>
module attributes {stable_mosaic.version = 11 : i64} {
  func.func @_fused_forward_kernel(%arg0: memref<16x16xf32, #tpu.memory_space<vmem>>, %arg1: memref<16x128xf32, #tpu.memory_space<vmem>>, %arg2: memref<16x160xf32, #tpu.memory_space<vmem>>, %arg3: memref<592x16xf32, #tpu.memory_space<vmem>>, %arg4: memref<736x128xf32, #tpu.memory_space<vmem>>, %arg5: memref<656x160xf32, #tpu.memory_space<vmem>>, %arg6: memref<16x16xf32, #tpu.memory_space<vmem>>) attributes {dimension_semantics = [], scalar_prefetch = 0 : i64, scratch_operands = 0 : i64, tpu.core_type = #tpu.core_type<tc>} {
    %c0 = arith.constant 0 : index
    %c0_0 = arith.constant 0 : index
    %0 = vector.load %arg0[%c0, %c0_0] : memref<16x16xf32, #tpu.memory_space<vmem>>, vector<16x16xf32>
    %c0_1 = arith.constant 0 : index
    %c0_2 = arith.constant 0 : index
    %1 = vector.load %arg1[%c0_1, %c0_2] : memref<16x128xf32, #tpu.memory_space<vmem>>, vector<16x128xf32>
    %c0_3 = arith.constant 0 : index
    %c0_4 = arith.constant 0 : index
    %2 = vector.load %arg2[%c0_3, %c0_4] : memref<16x160xf32, #tpu.memory_space<vmem>>, vector<16x160xf32>
    %c456 = arith.constant 456 : index
    %c0_5 = arith.constant 0 : index
    %3 = vector.load %arg4[%c456, %c0_5] : memref<736x128xf32, #tpu.memory_space<vmem>>, vector<8x128xf32>
    %c464 = arith.constant 464 : index
    %c0_6 = arith.constant 0 : index
    %4 = vector.load %arg4[%c464, %c0_6] : memref<736x128xf32, #tpu.memory_space<vmem>>, vector<16x128xf32>
    %c480 = arith.constant 480 : index
    %c0_7 = arith.constant 0 : index
    %5 = vector.load %arg4[%c480, %c0_7] : memref<736x128xf32, #tpu.memory_space<vmem>>, vector<128x128xf32>
    %c144 = arith.constant 144 : index
    %c0_8 = arith.constant 0 : index
    %6 = vector.load %arg3[%c144, %c0_8] : memref<592x16xf32, #tpu.memory_space<vmem>>, vector<128x16xf32>
    %c608 = arith.constant 608 : index
    %c0_9 = arith.constant 0 : index
    %7 = vector.load %arg4[%c608, %c0_9] : memref<736x128xf32, #tpu.memory_space<vmem>>, vector<128x128xf32>
    %c432 = arith.constant 432 : index
    %c0_10 = arith.constant 0 : index
    %8 = vector.load %arg4[%c432, %c0_10] : memref<736x128xf32, #tpu.memory_space<vmem>>, vector<16x128xf32>
    %cst = arith.constant dense<0.000000e+00> : vector<16x128xf32>
    %9 = tpu.matmul %0, %8, %cst {dimension_numbers = #tpu.dot_dimension_numbers<[1], [0], [0], [1], [0, 0, 1, 1], [], []>} : vector<16x16xf32>, vector<16x128xf32>, vector<16x128xf32> -> vector<16x128xf32>
    %c448 = arith.constant 448 : index
    %c0_11 = arith.constant 0 : index
    %10 = vector.load %arg4[%c448, %c0_11] : memref<736x128xf32, #tpu.memory_space<vmem>>, vector<1x128xf32>
    %11 = vector.broadcast %10 : vector<1x128xf32> to vector<16x128xf32>
    %12 = arith.addf %9, %11 : vector<16x128xf32>
    %c0_12 = arith.constant 0 : index
    %c0_13 = arith.constant 0 : index
    %13 = vector.load %arg4[%c0_12, %c0_13] : memref<736x128xf32, #tpu.memory_space<vmem>>, vector<16x128xf32>
    %c16 = arith.constant 16 : index
    %c0_14 = arith.constant 0 : index
    %14 = vector.load %arg4[%c16, %c0_14] : memref<736x128xf32, #tpu.memory_space<vmem>>, vector<8x128xf32>
    %c24 = arith.constant 24 : index
    %c0_15 = arith.constant 0 : index
    %15 = vector.load %arg4[%c24, %c0_15] : memref<736x128xf32, #tpu.memory_space<vmem>>, vector<128x128xf32>
    %c152 = arith.constant 152 : index
    %c0_16 = arith.constant 0 : index
    %16 = vector.load %arg4[%c152, %c0_16] : memref<736x128xf32, #tpu.memory_space<vmem>>, vector<1x128xf32>
    %cst_17 = arith.constant dense<0.000000e+00> : vector<16x128xf32>
    %17 = tpu.matmul %0, %13, %cst_17 {dimension_numbers = #tpu.dot_dimension_numbers<[1], [0], [0], [1], [0, 0, 1, 1], [], []>} : vector<16x16xf32>, vector<16x128xf32>, vector<16x128xf32> -> vector<16x128xf32>
    %cst_18 = arith.constant dense<0.000000e+00> : vector<16x128xf32>
    %18 = tpu.matmul %17, %15, %cst_18 {dimension_numbers = #tpu.dot_dimension_numbers<[1], [0], [0], [1], [0, 0, 1, 1], [], []>} : vector<16x128xf32>, vector<128x128xf32>, vector<16x128xf32> -> vector<16x128xf32>
    %cst_19 = arith.constant dense<0.000000e+00> : vector<8x16xf32>
    %19 = tpu.matmul %14, %17, %cst_19 {dimension_numbers = #tpu.dot_dimension_numbers<[1], [1], [0], [0], [0, 0, 1, 0], [], []>} : vector<8x128xf32>, vector<16x128xf32>, vector<8x16xf32> -> vector<8x16xf32>
    %cst_20 = arith.constant dense<0.000000e+00> : vector<8x128xf32>
    %20 = tpu.matmul %19, %4, %cst_20 {dimension_numbers = #tpu.dot_dimension_numbers<[1], [0], [0], [1], [0, 0, 1, 1], [], []>} : vector<8x16xf32>, vector<16x128xf32>, vector<8x128xf32> -> vector<8x128xf32>
    %21 = arith.mulf %20, %3 : vector<8x128xf32>
    %cst_21 = arith.constant dense<0.000000e+00> : vector<128xf32>
    %22 = vector.multi_reduction <add>, %21, %cst_21 [0] : vector<8x128xf32> to vector<128xf32>
    %23 = vector.shape_cast %22 : vector<128xf32> to vector<1x128xf32>
    %24 = vector.broadcast %23 : vector<1x128xf32> to vector<16x128xf32>
    %25 = arith.addf %18, %24 : vector<16x128xf32>
    %cst_22 = arith.constant 2.000000e-01 : f32
    %26 = vector.broadcast %cst_22 : f32 to vector<16x128xf32>
    %27 = arith.mulf %26, %25 : vector<16x128xf32>
    %28 = arith.maximumf %25, %27 : vector<16x128xf32>
    %29 = arith.addf %28, %1 : vector<16x128xf32>
    %cst_23 = arith.constant dense<0xFF800000> : vector<16xf32>
    %30 = vector.multi_reduction <maximumf>, %29, %cst_23 [1] : vector<16x128xf32> to vector<16xf32>
    %31 = vector.shape_cast %30 : vector<16xf32> to vector<16x1xf32>
    %32 = vector.broadcast %31 : vector<16x1xf32> to vector<16x128xf32>
    %33 = arith.subf %29, %32 : vector<16x128xf32>
    %34 = math.exp %33 : vector<16x128xf32>
    %cst_24 = arith.constant dense<0.000000e+00> : vector<16x128xf32>
    %35 = tpu.matmul %34, %5, %cst_24 {dimension_numbers = #tpu.dot_dimension_numbers<[1], [0], [0], [1], [0, 0, 1, 1], [], []>} : vector<16x128xf32>, vector<128x128xf32>, vector<16x128xf32> -> vector<16x128xf32>
    %cst_25 = arith.constant 1.000000e-30 : f32
    %36 = vector.broadcast %cst_25 : f32 to vector<16x128xf32>
    %37 = arith.maximumf %35, %36 : vector<16x128xf32>
    %38 = tpu.reciprocal %37 {approx = true} : vector<16x128xf32> -> vector<16x128xf32>
    %39 = arith.mulf %34, %38 : vector<16x128xf32>
    %cst_26 = arith.constant dense<0.000000e+00> : vector<128x128xf32>
    %40 = tpu.matmul %6, %17, %cst_26 {dimension_numbers = #tpu.dot_dimension_numbers<[1], [0], [0], [1], [0, 0, 1, 1], [], []>} : vector<128x16xf32>, vector<16x128xf32>, vector<128x128xf32> -> vector<128x128xf32>
    %41 = arith.mulf %40, %7 : vector<128x128xf32>
    %cst_27 = arith.constant dense<0.000000e+00> : vector<16x128xf32>
    %42 = tpu.matmul %39, %41, %cst_27 {dimension_numbers = #tpu.dot_dimension_numbers<[1], [0], [0], [1], [0, 0, 1, 1], [], []>} : vector<16x128xf32>, vector<128x128xf32>, vector<16x128xf32> -> vector<16x128xf32>
    %43 = vector.broadcast %16 : vector<1x128xf32> to vector<16x128xf32>
    %44 = arith.addf %42, %43 : vector<16x128xf32>
    %cst_28 = arith.constant 0.000000e+00 : f32
    %45 = vector.broadcast %cst_28 : f32 to vector<16x128xf32>
    %46 = arith.cmpf ogt, %44, %45 : vector<16x128xf32>
    %cst_29 = arith.constant 0.000000e+00 : f32
    %47 = vector.broadcast %cst_29 : f32 to vector<16x128xf32>
    %48 = arith.minimumf %44, %47 : vector<16x128xf32>
    %49 = math.exp %48 : vector<16x128xf32>
    %cst_30 = arith.constant 1.000000e+00 : f32
    %50 = vector.broadcast %cst_30 : f32 to vector<16x128xf32>
    %51 = arith.subf %49, %50 : vector<16x128xf32>
    %52 = arith.select %46, %44, %51 : vector<16x128xi1>, vector<16x128xf32>
    %53 = arith.addf %52, %12 : vector<16x128xf32>
    %c160 = arith.constant 160 : index
    %c0_31 = arith.constant 0 : index
    %54 = vector.load %arg4[%c160, %c0_31] : memref<736x128xf32, #tpu.memory_space<vmem>>, vector<128x128xf32>
    %c288 = arith.constant 288 : index
    %c0_32 = arith.constant 0 : index
    %55 = vector.load %arg4[%c288, %c0_32] : memref<736x128xf32, #tpu.memory_space<vmem>>, vector<8x128xf32>
    %c296 = arith.constant 296 : index
    %c0_33 = arith.constant 0 : index
    %56 = vector.load %arg4[%c296, %c0_33] : memref<736x128xf32, #tpu.memory_space<vmem>>, vector<128x128xf32>
    %c424 = arith.constant 424 : index
    %c0_34 = arith.constant 0 : index
    %57 = vector.load %arg4[%c424, %c0_34] : memref<736x128xf32, #tpu.memory_space<vmem>>, vector<1x128xf32>
    %cst_35 = arith.constant dense<0.000000e+00> : vector<16x128xf32>
    %58 = tpu.matmul %53, %54, %cst_35 {dimension_numbers = #tpu.dot_dimension_numbers<[1], [0], [0], [1], [0, 0, 1, 1], [], []>} : vector<16x128xf32>, vector<128x128xf32>, vector<16x128xf32> -> vector<16x128xf32>
    %cst_36 = arith.constant dense<0.000000e+00> : vector<16x128xf32>
    %59 = tpu.matmul %58, %56, %cst_36 {dimension_numbers = #tpu.dot_dimension_numbers<[1], [0], [0], [1], [0, 0, 1, 1], [], []>} : vector<16x128xf32>, vector<128x128xf32>, vector<16x128xf32> -> vector<16x128xf32>
    %cst_37 = arith.constant dense<0.000000e+00> : vector<8x16xf32>
    %60 = tpu.matmul %55, %58, %cst_37 {dimension_numbers = #tpu.dot_dimension_numbers<[1], [1], [0], [0], [0, 0, 1, 0], [], []>} : vector<8x128xf32>, vector<16x128xf32>, vector<8x16xf32> -> vector<8x16xf32>
    %cst_38 = arith.constant dense<0.000000e+00> : vector<8x128xf32>
    %61 = tpu.matmul %60, %4, %cst_38 {dimension_numbers = #tpu.dot_dimension_numbers<[1], [0], [0], [1], [0, 0, 1, 1], [], []>} : vector<8x16xf32>, vector<16x128xf32>, vector<8x128xf32> -> vector<8x128xf32>
    %62 = arith.mulf %61, %3 : vector<8x128xf32>
    %cst_39 = arith.constant dense<0.000000e+00> : vector<128xf32>
    %63 = vector.multi_reduction <add>, %62, %cst_39 [0] : vector<8x128xf32> to vector<128xf32>
    %64 = vector.shape_cast %63 : vector<128xf32> to vector<1x128xf32>
    %65 = vector.broadcast %64 : vector<1x128xf32> to vector<16x128xf32>
    %66 = arith.addf %59, %65 : vector<16x128xf32>
    %cst_40 = arith.constant 2.000000e-01 : f32
    %67 = vector.broadcast %cst_40 : f32 to vector<16x128xf32>
    %68 = arith.mulf %67, %66 : vector<16x128xf32>
    %69 = arith.maximumf %66, %68 : vector<16x128xf32>
    %70 = arith.addf %69, %1 : vector<16x128xf32>
    %cst_41 = arith.constant dense<0xFF800000> : vector<16xf32>
    %71 = vector.multi_reduction <maximumf>, %70, %cst_41 [1] : vector<16x128xf32> to vector<16xf32>
    %72 = vector.shape_cast %71 : vector<16xf32> to vector<16x1xf32>
    %73 = vector.broadcast %72 : vector<16x1xf32> to vector<16x128xf32>
    %74 = arith.subf %70, %73 : vector<16x128xf32>
    %75 = math.exp %74 : vector<16x128xf32>
    %cst_42 = arith.constant dense<0.000000e+00> : vector<16x128xf32>
    %76 = tpu.matmul %75, %5, %cst_42 {dimension_numbers = #tpu.dot_dimension_numbers<[1], [0], [0], [1], [0, 0, 1, 1], [], []>} : vector<16x128xf32>, vector<128x128xf32>, vector<16x128xf32> -> vector<16x128xf32>
    %cst_43 = arith.constant 1.000000e-30 : f32
    %77 = vector.broadcast %cst_43 : f32 to vector<16x128xf32>
    %78 = arith.maximumf %76, %77 : vector<16x128xf32>
    %79 = tpu.reciprocal %78 {approx = true} : vector<16x128xf32> -> vector<16x128xf32>
    %80 = arith.mulf %75, %79 : vector<16x128xf32>
    %cst_44 = arith.constant dense<0.000000e+00> : vector<128x128xf32>
    %81 = tpu.matmul %6, %58, %cst_44 {dimension_numbers = #tpu.dot_dimension_numbers<[1], [0], [0], [1], [0, 0, 1, 1], [], []>} : vector<128x16xf32>, vector<16x128xf32>, vector<128x128xf32> -> vector<128x128xf32>
    %82 = arith.mulf %81, %7 : vector<128x128xf32>
    %cst_45 = arith.constant dense<0.000000e+00> : vector<16x128xf32>
    %83 = tpu.matmul %80, %82, %cst_45 {dimension_numbers = #tpu.dot_dimension_numbers<[1], [0], [0], [1], [0, 0, 1, 1], [], []>} : vector<16x128xf32>, vector<128x128xf32>, vector<16x128xf32> -> vector<16x128xf32>
    %84 = vector.broadcast %57 : vector<1x128xf32> to vector<16x128xf32>
    %85 = arith.addf %83, %84 : vector<16x128xf32>
    %cst_46 = arith.constant 0.000000e+00 : f32
    %86 = vector.broadcast %cst_46 : f32 to vector<16x128xf32>
    %87 = arith.cmpf ogt, %85, %86 : vector<16x128xf32>
    %cst_47 = arith.constant 0.000000e+00 : f32
    %88 = vector.broadcast %cst_47 : f32 to vector<16x128xf32>
    %89 = arith.minimumf %85, %88 : vector<16x128xf32>
    %90 = math.exp %89 : vector<16x128xf32>
    %cst_48 = arith.constant 1.000000e+00 : f32
    %91 = vector.broadcast %cst_48 : f32 to vector<16x128xf32>
    %92 = arith.subf %90, %91 : vector<16x128xf32>
    %93 = arith.select %87, %85, %92 : vector<16x128xi1>, vector<16x128xf32>
    %94 = arith.addf %93, %53 : vector<16x128xf32>
    %c8 = arith.constant 8 : index
    %c0_49 = arith.constant 0 : index
    %95 = vector.load %arg3[%c8, %c0_49] : memref<592x16xf32, #tpu.memory_space<vmem>>, vector<128x16xf32>
    %cst_50 = arith.constant dense<0.000000e+00> : vector<16x16xf32>
    %96 = tpu.matmul %94, %95, %cst_50 {dimension_numbers = #tpu.dot_dimension_numbers<[1], [0], [0], [1], [0, 0, 1, 1], [], []>} : vector<16x128xf32>, vector<128x16xf32>, vector<16x16xf32> -> vector<16x16xf32>
    %c136 = arith.constant 136 : index
    %c0_51 = arith.constant 0 : index
    %97 = vector.load %arg3[%c136, %c0_51] : memref<592x16xf32, #tpu.memory_space<vmem>>, vector<1x16xf32>
    %98 = vector.broadcast %97 : vector<1x16xf32> to vector<16x16xf32>
    %99 = arith.addf %96, %98 : vector<16x16xf32>
    %c0_52 = arith.constant 0 : index
    %c0_53 = arith.constant 0 : index
    %100 = vector.load %arg5[%c0_52, %c0_53] : memref<656x160xf32, #tpu.memory_space<vmem>>, vector<128x160xf32>
    %c128 = arith.constant 128 : index
    %c0_54 = arith.constant 0 : index
    %101 = vector.load %arg5[%c128, %c0_54] : memref<656x160xf32, #tpu.memory_space<vmem>>, vector<10x160xf32>
    %c144_55 = arith.constant 144 : index
    %c0_56 = arith.constant 0 : index
    %102 = vector.load %arg5[%c144_55, %c0_56] : memref<656x160xf32, #tpu.memory_space<vmem>>, vector<160x160xf32>
    %c0_57 = arith.constant 0 : index
    %c0_58 = arith.constant 0 : index
    %103 = vector.load %arg3[%c0_57, %c0_58] : memref<592x16xf32, #tpu.memory_space<vmem>>, vector<1x16xf32>
    %c304 = arith.constant 304 : index
    %c0_59 = arith.constant 0 : index
    %104 = vector.load %arg5[%c304, %c0_59] : memref<656x160xf32, #tpu.memory_space<vmem>>, vector<10x160xf32>
    %c320 = arith.constant 320 : index
    %c0_60 = arith.constant 0 : index
    %105 = vector.load %arg5[%c320, %c0_60] : memref<656x160xf32, #tpu.memory_space<vmem>>, vector<16x160xf32>
    %c336 = arith.constant 336 : index
    %c0_61 = arith.constant 0 : index
    %106 = vector.load %arg5[%c336, %c0_61] : memref<656x160xf32, #tpu.memory_space<vmem>>, vector<160x160xf32>
    %c272 = arith.constant 272 : index
    %c0_62 = arith.constant 0 : index
    %107 = vector.load %arg3[%c272, %c0_62] : memref<592x16xf32, #tpu.memory_space<vmem>>, vector<160x16xf32>
    %c496 = arith.constant 496 : index
    %c0_63 = arith.constant 0 : index
    %108 = vector.load %arg5[%c496, %c0_63] : memref<656x160xf32, #tpu.memory_space<vmem>>, vector<160x160xf32>
    %c432_64 = arith.constant 432 : index
    %c0_65 = arith.constant 0 : index
    %109 = vector.load %arg3[%c432_64, %c0_65] : memref<592x16xf32, #tpu.memory_space<vmem>>, vector<160x16xf32>
    %cst_66 = arith.constant dense<0.000000e+00> : vector<16x160xf32>
    %110 = tpu.matmul %94, %100, %cst_66 {dimension_numbers = #tpu.dot_dimension_numbers<[1], [0], [0], [1], [0, 0, 1, 1], [], []>} : vector<16x128xf32>, vector<128x160xf32>, vector<16x160xf32> -> vector<16x160xf32>
    %cst_67 = arith.constant dense<0.000000e+00> : vector<16x160xf32>
    %111 = tpu.matmul %110, %102, %cst_67 {dimension_numbers = #tpu.dot_dimension_numbers<[1], [0], [0], [1], [0, 0, 1, 1], [], []>} : vector<16x160xf32>, vector<160x160xf32>, vector<16x160xf32> -> vector<16x160xf32>
    %cst_68 = arith.constant dense<0.000000e+00> : vector<10x16xf32>
    %112 = tpu.matmul %101, %110, %cst_68 {dimension_numbers = #tpu.dot_dimension_numbers<[1], [1], [0], [0], [0, 0, 1, 0], [], []>} : vector<10x160xf32>, vector<16x160xf32>, vector<10x16xf32> -> vector<10x16xf32>
    %cst_69 = arith.constant dense<0.000000e+00> : vector<10x160xf32>
    %113 = tpu.matmul %112, %105, %cst_69 {dimension_numbers = #tpu.dot_dimension_numbers<[1], [0], [0], [1], [0, 0, 1, 1], [], []>} : vector<10x16xf32>, vector<16x160xf32>, vector<10x160xf32> -> vector<10x160xf32>
    %114 = arith.mulf %113, %104 : vector<10x160xf32>
    %cst_70 = arith.constant dense<0.000000e+00> : vector<160xf32>
    %115 = vector.multi_reduction <add>, %114, %cst_70 [0] : vector<10x160xf32> to vector<160xf32>
    %116 = vector.shape_cast %115 : vector<160xf32> to vector<1x160xf32>
    %117 = vector.broadcast %116 : vector<1x160xf32> to vector<16x160xf32>
    %118 = arith.addf %111, %117 : vector<16x160xf32>
    %cst_71 = arith.constant 2.000000e-01 : f32
    %119 = vector.broadcast %cst_71 : f32 to vector<16x160xf32>
    %120 = arith.mulf %119, %118 : vector<16x160xf32>
    %121 = arith.maximumf %118, %120 : vector<16x160xf32>
    %122 = arith.addf %121, %2 : vector<16x160xf32>
    %cst_72 = arith.constant dense<0xFF800000> : vector<16xf32>
    %123 = vector.multi_reduction <maximumf>, %122, %cst_72 [1] : vector<16x160xf32> to vector<16xf32>
    %124 = vector.shape_cast %123 : vector<16xf32> to vector<16x1xf32>
    %125 = vector.broadcast %124 : vector<16x1xf32> to vector<16x160xf32>
    %126 = arith.subf %122, %125 : vector<16x160xf32>
    %127 = math.exp %126 : vector<16x160xf32>
    %cst_73 = arith.constant dense<0.000000e+00> : vector<16x160xf32>
    %128 = tpu.matmul %127, %106, %cst_73 {dimension_numbers = #tpu.dot_dimension_numbers<[1], [0], [0], [1], [0, 0, 1, 1], [], []>} : vector<16x160xf32>, vector<160x160xf32>, vector<16x160xf32> -> vector<16x160xf32>
    %cst_74 = arith.constant 1.000000e-30 : f32
    %129 = vector.broadcast %cst_74 : f32 to vector<16x160xf32>
    %130 = arith.maximumf %128, %129 : vector<16x160xf32>
    %131 = tpu.reciprocal %130 {approx = true} : vector<16x160xf32> -> vector<16x160xf32>
    %132 = arith.mulf %127, %131 : vector<16x160xf32>
    %cst_75 = arith.constant dense<0.000000e+00> : vector<160x160xf32>
    %133 = tpu.matmul %107, %110, %cst_75 {dimension_numbers = #tpu.dot_dimension_numbers<[1], [0], [0], [1], [0, 0, 1, 1], [], []>} : vector<160x16xf32>, vector<16x160xf32>, vector<160x160xf32> -> vector<160x160xf32>
    %134 = arith.mulf %133, %108 : vector<160x160xf32>
    %cst_76 = arith.constant dense<0.000000e+00> : vector<16x160xf32>
    %135 = tpu.matmul %132, %134, %cst_76 {dimension_numbers = #tpu.dot_dimension_numbers<[1], [0], [0], [1], [0, 0, 1, 1], [], []>} : vector<16x160xf32>, vector<160x160xf32>, vector<16x160xf32> -> vector<16x160xf32>
    %cst_77 = arith.constant dense<0.000000e+00> : vector<16x16xf32>
    %136 = tpu.matmul %135, %109, %cst_77 {dimension_numbers = #tpu.dot_dimension_numbers<[1], [0], [0], [1], [0, 0, 1, 1], [], []>} : vector<16x160xf32>, vector<160x16xf32>, vector<16x16xf32> -> vector<16x16xf32>
    %137 = vector.broadcast %103 : vector<1x16xf32> to vector<16x16xf32>
    %138 = arith.addf %136, %137 : vector<16x16xf32>
    %139 = arith.addf %138, %99 : vector<16x16xf32>
    %c0_78 = arith.constant 0 : index
    %c0_79 = arith.constant 0 : index
    %140 = vector.load %arg6[%c0_78, %c0_79] : memref<16x16xf32, #tpu.memory_space<vmem>>, vector<16x16xf32>
    tpu.vector_store %arg6[%c0_78, %c0_79], %139 {strides = array<i32>} : memref<16x16xf32, #tpu.memory_space<vmem>>, vector<16x16xf32>,
    return
  }
}

</mosaic_0001>

<bundles_post_ra>
// kernel: forward.1
= control target key start
LH: loop header
LB: loop body
LE: loop exit
PB: predicated region body
PF: predicated region fallthrough
CT: control target
= control target key end

     0   :  { %vm87_vm0 = vcmask 130048   ;;  %s3491_s0 = inlined_call_operand.vmem [shape: f32[16,16], index: 0, kind: input, shape index: {}]   ;;  %s3492_s1 = inlined_call_operand.vmem [shape: f32[16,128], index: 1, kind: input, shape index: {}]   ;;  %s3493_s2 = inlined_call_operand.vmem [shape: f32[16,160], index: 2, kind: input, shape index: {}]   ;;  %s3494_s3 = inlined_call_operand.vmem [shape: f32[592,16], index: 3, kind: input, shape index: {}]   ;;  %s3495_s4 = inlined_call_operand.vmem [shape: f32[736,128], index: 4, kind: input, shape index: {}]   ;;  %s3496_s5 = inlined_call_operand.vmem [shape: f32[656,160], index: 5, kind: input, shape index: {}]   ;;  %s3497_s6 = inlined_call_operand.hbm [shape: f32[16,16], index: 6, kind: output, shape index: {}]  }
   0x1   :  { %v118_v0 = vld [vmem:[%s3495_s4 + $0x8] sm:$0xff]  ;;  %v117_v1 = vld [vmem:[%s3495_s4] sm:$0xff]  ;;  %v84_v3 = vld [vmem:[%s3495_s4 + $0x1b8] sm:$0xff] }
   0x2   :  { %151 = vmatpush.msra.mxu1 %v118_v0  ;;  %v24_v2 = vld [vmem:[%s3491_s0] sm:$0xff]  ;;  %v83_v4 = vld [vmem:[%s3495_s4 + $0x1b0] sm:$0xff]  ;;  %108 = vmatpush.msra.mxu0 %v84_v3  ;;  %v134_v6 = vld [vmem:[%s3495_s4 + $0x88] sm:$0xff] }
   0x3   :  { %v135_v5 = vld [vmem:[%s3495_s4 + $0x90] sm:$0xff]  ;;  %v133_v7 = vld [vmem:[%s3495_s4 + $0x80] sm:$0xff]  ;;  %v132_v8 = vld [vmem:[%s3495_s4 + $0x78] sm:$0xff] }
   0x4   :  { %152 = vmatpush.msra.mxu1 %v117_v1  ;;  %109 = vmatpush.msra.mxu0 %v83_v4 }
   0x5   :  { %1828 = vmatmul.msk.f32.vlgmr.msra.gmra.mxu1 %vm87_vm0, %v24_v2  ;;  %1826 = vmatmul.msk.f32.vlgmr.msra.gmra.mxu0 %vm87_vm0, %v24_v2 }
   0x6   :  { %210 = vmatpush.msrb.mxu0 %v135_v5 }
   0x8   :  { %211 = vmatpush.msrb.mxu0 %v134_v6 }
   0x9   :  { %11 = vsyncpa [#allocation3], 0  ;;  %v25_v9 = vld [vmem:[%s3491_s0 + $0x8] sm:$0xff]  ;;  %v131_v10 = vld [vmem:[%s3495_s4 + $0x70] sm:$0xff]  ;;  %vm1031_vm5 = vcmask 261120   ;;  %vm1156_vm6 = vcmask 254976  }
   0xa   :  { %212 = vmatpush.msrb.mxu0 %v133_v7  ;;  %v130_v11 = vld [vmem:[%s3495_s4 + $0x68] sm:$0xff]  ;;  %v129_v12 = vld [vmem:[%s3495_s4 + $0x60] sm:$0xff]  ;;  %v128_v13 = vld [vmem:[%s3495_s4 + $0x58] sm:$0xff]  ;;  %vm1146_vm7 = vcmask 1041408   ;;  %s2006_s29 = smov [#allocation2]   ;;  %s1814_s8 = sshll.u32 %s3497_s6, 4  ;;  %s1815_s8 = int_to_ptr.hbm [resolvable:$true] %s1814_s8 }
   0xb   :  { %v127_v14 = vld [vmem:[%s3495_s4 + $0x50] sm:$0xff]  ;;  %v126_v15 = vld [vmem:[%s3495_s4 + $0x48] sm:$0xff]  ;;  %v125_v16 = vld [vmem:[%s3495_s4 + $0x40] sm:$0xff]  ;;  %s1812_s30 = sshll.u32 %s2006_s29, 4  ;;  %s2008_s9 = smov 8   ;;  %s1813_s30 = int_to_ptr.vmem [resolvable:$true] %s1812_s30 }
   0xc   :  { %213 = vmatpush.msrb.mxu0 %v132_v8  ;;  %v124_v17 = vld [vmem:[%s3495_s4 + $0x38] sm:$0xff]  ;;  %v123_v18 = vld [vmem:[%s3495_s4 + $0x30] sm:$0xff]  ;;  %v122_v19 = vld [vmem:[%s3495_s4 + $0x28] sm:$0xff] }
   0xd   :  { %1829 = vmatmul.msk.f32.gmra.mxu1 %vm87_vm0, %v25_v9  ;;  %1827 = vmatmul.msk.f32.gmra.mxu0 %vm87_vm0, %v25_v9  ;;  %v121_v20 = vld [vmem:[%s3495_s4 + $0x20] sm:$0xff]  ;;  %v120_v21 = vld [vmem:[%s3495_s4 + $0x18] sm:$0xff]  ;;  %v33_v23 = vld [vmem:[%s3495_s4 + $0x1d0] sm:$0xff] }
   0xe   :  { %214 = vmatpush.msrb.mxu0 %v131_v10  ;;  %v34_v22 = vld [vmem:[%s3495_s4 + $0x1d8] sm:$0xff]  ;;  %v119_v26 = vld [vmem:[%s3495_s4 + $0x10] sm:$0xff]  ;;  %v2141_v30 = vld [vmem:[%s3494_s3 + $0xa0] sm:$0xff] }
   0xf   :  { %197 = vmatpush.msra.mxu3 %v34_v22  ;;  %v2127_v28 = vld [vmem:[%s3494_s3 + $0x90] sm:$0xff]  ;;  %v2134_v29 = vld [vmem:[%s3494_s3 + $0x98] sm:$0xff]  ;;  %v2148_v31 = vld [vmem:[%s3494_s3 + $0xa8] sm:$0xff] }
  0x10   :  { %215 = vmatpush.msrb.mxu0 %v130_v11  ;;  %v2155_v32 = vld [vmem:[%s3494_s3 + $0xb0] sm:$0xff]  ;;  %v2162_v33 = vld [vmem:[%s3494_s3 + $0xb8] sm:$0xff]  ;;  %v2169_v34 = vld [vmem:[%s3494_s3 + $0xc0] sm:$0xff] }
  0x11   :  { %198 = vmatpush.msra.mxu3 %v33_v23  ;;  %v2176_v35 = vld [vmem:[%s3494_s3 + $0xc8] sm:$0xff]  ;;  %v2183_v36 = vld [vmem:[%s3494_s3 + $0xd0] sm:$0xff]  ;;  %v2190_v37 = vld [vmem:[%s3494_s3 + $0xd8] sm:$0xff] }
  0x12   :  { %216 = vmatpush.msrb.mxu0 %v129_v12  ;;  %v2197_v38 = vld [vmem:[%s3494_s3 + $0xe0] sm:$0xff]  ;;  %v2204_v39 = vld [vmem:[%s3494_s3 + $0xe8] sm:$0xff]  ;;  %v2211_v40 = vld [vmem:[%s3494_s3 + $0xf0] sm:$0xff] }
  0x13   :  { %v2218_v41 = vld [vmem:[%s3494_s3 + $0xf8] sm:$0xff]  ;;  %v2227_v43 = vld [vmem:[%s3494_s3 + $0x100] sm:$0xff]  ;;  %v2234_v44 = vld [vmem:[%s3494_s3 + $0x108] sm:$0xff] }
  0x14   :  { %217 = vmatpush.msrb.mxu0 %v128_v13  ;;  %v2243_v46 = vld [vmem:[%s3495_s4 + $0x1c8] sm:$0xff]  ;;  %v2253_v62 = vld [vmem:[%s3492_s1] sm:$0xff]  ;;  %v50_v11 = vld [vmem:[%s3495_s4 + $0x258] sm:$0xff] }
  0x15   :  { %v2264_v4 = vld [vmem:[%s3492_s1 + $0x8] sm:$0xff]  ;;  %v49_v12 = vld [vmem:[%s3495_s4 + $0x250] sm:$0xff]  ;;  %249 = vmatpush.msrb.mxu1 %v50_v11 }
  0x16   :  { %218 = vmatpush.msrb.mxu0 %v127_v14  ;;  %v48_v13 = vld [vmem:[%s3495_s4 + $0x248] sm:$0xff] }
  0x17   :  { %250 = vmatpush.msrb.mxu1 %v49_v12 }
  0x18   :  { %219 = vmatpush.msrb.mxu0 %v126_v15  ;;  %v47_v15 = vld [vmem:[%s3495_s4 + $0x240] sm:$0xff] }
  0x19   :  { %251 = vmatpush.msrb.mxu1 %v48_v13 }
  0x1a   :  { %220 = vmatpush.msrb.mxu0 %v125_v16  ;;  %v46_v16 = vld [vmem:[%s3495_s4 + $0x238] sm:$0xff] }
  0x1b   :  { %252 = vmatpush.msrb.mxu1 %v47_v15 }
  0x1c   :  { %221 = vmatpush.msrb.mxu0 %v124_v17  ;;  %v45_v17 = vld [vmem:[%s3495_s4 + $0x230] sm:$0xff] }
  0x1d   :  { %253 = vmatpush.msrb.mxu1 %v46_v16 }
  0x1e   :  { %222 = vmatpush.msrb.mxu0 %v123_v18  ;;  %v44_v18 = vld [vmem:[%s3495_s4 + $0x228] sm:$0xff] }
  0x1f   :  { %254 = vmatpush.msrb.mxu1 %v45_v17 }
  0x20   :  { %223 = vmatpush.msrb.mxu0 %v122_v19 }
  0x21   :  { %255 = vmatpush.msrb.mxu1 %v44_v18 }
  0x22   :  { %224 = vmatpush.msrb.mxu0 %v121_v20  ;;  %v43_v20 = vld [vmem:[%s3495_s4 + $0x220] sm:$0xff] }
  0x23   :  { %256 = vmatpush.msrb.mxu1 %v43_v20 }
  0x24   :  { %225 = vmatpush.msrb.mxu0 %v120_v21  ;;  %v42_v21 = vld [vmem:[%s3495_s4 + $0x218] sm:$0xff] }
  0x25   :  { %257 = vmatpush.msrb.mxu1 %v42_v21 }
  0x82   :  { %v154_v24 = vpop.f32.mrf.mxu1  ;;  %v2222_v42 = vpop.f32.mrf.mxu0 }
  0x83   :  { %226 = vmatmul.f32.vlgmr.msrb.gmra.mxu0 %v154_v24 }
  0x8a   :  { %v157_v25 = vpop.f32.mrf.mxu1  ;;  %v2236_v45 = vpop.f32.mrf.mxu0 }
  0x8b   :  { %174 = vmatpush.xpose.msra.mxu2 %v157_v25  ;;  %229 = vmatmul.f32.gmra.mxu0 %v157_v25 }
  0x8c   :  { %340 = vmatpush.msrb.mxu3 %v157_v25  ;;  %v39_v25 = vld [vmem:[%s3495_s4 + $0x200] sm:$0xff] }
  0x8e   :  { %341 = vmatpush.msrb.mxu3 %v154_v24 }
  0x8f   :  { %175 = vmatpush.xpose.msra.mxu2 %v154_v24 }
  0x92   :  { %176 = vmatmul.f32.vlgmr.msra.gmra.mxu2 %v119_v26  ;;  %v38_v26 = vld [vmem:[%s3495_s4 + $0x1f8] sm:$0xff] }
  0x93   :  { %539 = vmatpush.msrb.mxu2 %v34_v22  ;;  %v41_v22 = vld [vmem:[%s3495_s4 + $0x210] sm:$0xff] }
  0x94   :  { %258 = vmatpush.msrb.mxu1 %v41_v22 }
  0x95   :  { %540 = vmatpush.msrb.mxu2 %v33_v23  ;;  %v40_v23 = vld [vmem:[%s3495_s4 + $0x208] sm:$0xff] }
  0x96   :  { %259 = vmatpush.msrb.mxu1 %v40_v23 }
  0x97   :  { %591 = vmatpush.msra.mxu2 %v50_v11  ;;  %v2362_v11 = vld [vmem:[%s3495_s4 + $0x2b0] sm:$0xff] }
  0x98   :  { %260 = vmatpush.msrb.mxu1 %v39_v25 }
  0x99   :  { %592 = vmatpush.msra.mxu2 %v49_v12 }
  0x9a   :  { %261 = vmatpush.msrb.mxu1 %v38_v26 }
  0x9b   :  { %593 = vmatpush.msra.mxu2 %v48_v13  ;;  %v2368_v13 = vld [vmem:[%s3495_s4 + $0x2a8] sm:$0xff] }
  0x9d   :  { %594 = vmatpush.msra.mxu2 %v47_v15 }
  0x9f   :  { %595 = vmatpush.msra.mxu2 %v46_v16  ;;  %v2374_v16 = vld [vmem:[%s3495_s4 + $0x2a0] sm:$0xff] }
  0xa1   :  { %596 = vmatpush.msra.mxu2 %v45_v17 }
  0xa3   :  { %597 = vmatpush.msra.mxu2 %v44_v18 }
  0xa5   :  { %598 = vmatpush.msra.mxu2 %v43_v20 }
  0xa7   :  { %599 = vmatpush.msra.mxu2 %v42_v21  ;;  %v2381_v21 = vld [vmem:[%s3495_s4 + $0x298] sm:$0xff] }
  0xa9   :  { %600 = vmatpush.msra.mxu2 %v41_v22 }
  0xab   :  { %601 = vmatpush.msra.mxu2 %v40_v23 }
  0xad   :  { %602 = vmatpush.msra.mxu2 %v39_v25  ;;  %v2402_v25 = vld [vmem:[%s3495_s4 + $0x280] sm:$0xff] }
  0xaf   :  { %603 = vmatpush.msra.mxu2 %v38_v26 }
 0x100   :  { %v227_v51 = vpop.f32.mrf.mxu0 }
 0x108   :  { %v230_v58 = vpop.f32.mrf.mxu0 }
 0x115   :  { %v177_v27 = vpop.f32.mrf.mxu2 }
 0x116   :  { %1830 = vmatmul.msk.f32.vlgmr.msra.gmra.mxu3 %vm87_vm0, %v177_v27  ;;  %v37_v27 = vld [vmem:[%s3495_s4 + $0x1f0] sm:$0xff] }
 0x117   :  { %262 = vmatpush.msrb.mxu1 %v37_v27  ;;  %604 = vmatpush.msra.mxu2 %v37_v27 }
 0x11e   :  { %1831 = vmatmul.msk.f32.vlgmr.msrb.gmra.mxu3 %vm87_vm0, %v2127_v28 }
 0x126   :  { %1832 = vmatmul.msk.f32.gmra.mxu3 %vm87_vm0, %v2134_v29 }
 0x12e   :  { %1833 = vmatmul.msk.f32.gmra.mxu3 %vm87_vm0, %v2141_v30 }
 0x136   :  { %1834 = vmatmul.msk.f32.gmra.mxu3 %vm87_vm0, %v2148_v31 }
 0x13e   :  { %1835 = vmatmul.msk.f32.gmra.mxu3 %vm87_vm0, %v2155_v32 }
 0x146   :  { %1836 = vmatmul.msk.f32.gmra.mxu3 %vm87_vm0, %v2162_v33 }
 0x14e   :  { %1837 = vmatmul.msk.f32.gmra.mxu3 %vm87_vm0, %v2169_v34 }
 0x156   :  { %1838 = vmatmul.msk.f32.gmra.mxu3 %vm87_vm0, %v2176_v35 }
 0x15e   :  { %1839 = vmatmul.msk.f32.gmra.mxu3 %vm87_vm0, %v2183_v36 }
 0x166   :  { %1840 = vmatmul.msk.f32.gmra.mxu3 %vm87_vm0, %v2190_v37 }
 0x16e   :  { %1841 = vmatmul.msk.f32.gmra.mxu3 %vm87_vm0, %v2197_v38 }
 0x176   :  { %1842 = vmatmul.msk.f32.gmra.mxu3 %vm87_vm0, %v2204_v39 }
 0x17e   :  { %1843 = vmatmul.msk.f32.gmra.mxu3 %vm87_vm0, %v2211_v40 }
 0x186   :  { %1844 = vmatmul.msk.f32.gmra.mxu3 %vm87_vm0, %v2218_v41 }
 0x18e   :  { %1845 = vmatmul.msk.f32.gmra.mxu3 %vm87_vm0, %v2227_v43 }
 0x196   :  { %1846 = vmatmul.msk.f32.gmra.mxu3 %vm87_vm0, %v2234_v44 }
 0x199   :  { %v200_v47 = vpop.f32.mrf.mxu3 }
 0x19a   :  { %v203_v48 = vmul.f32 %v200_v47, %v2243_v46  ;;  %v36_v47 = vld [vmem:[%s3495_s4 + $0x1e8] sm:$0xff] }
 0x19b   :  { %263 = vmatpush.msrb.mxu1 %v36_v47  ;;  %605 = vmatpush.msra.mxu2 %v36_v47  ;;  %v2410_v47 = vld [vmem:[%s3495_s4 + $0x278] sm:$0xff] }
 0x19c   :  { %v204_v49 = vrot.slane %v203_v48, 4 }
 0x19e   :  { %v205_v50 = vadd.f32 %v204_v49, %v203_v48  ;;  %v35_v49 = vld [vmem:[%s3495_s4 + $0x1e0] sm:$0xff] }
 0x19f   :  { %264 = vmatpush.msrb.mxu1 %v35_v49  ;;  %606 = vmatpush.msra.mxu2 %v35_v49 }
 0x1a0   :  { %v206_v52 = vrot.slane %v205_v50, 2 }
 0x1a1   :  { %v2246_v53 = vpop.f32.mrf.mxu3 }
 0x1a2   :  { %v207_v54 = vadd.f32 %v206_v52, %v205_v50 }
 0x1a4   :  { %v208_v55 = vrot.slane %v207_v54, 1 }
 0x1a6   :  { %v209_v56 = vadd.f32 %v208_v55, %v207_v54  ;;  %v2333_v54 = vld [vmem:[%s3495_s4 + $0x2d0] sm:$0xff]  ;;  %v2338_v55 = vld [vmem:[%s3495_s4 + $0x2d8] sm:$0xff] }
 0x1a8   :  { %v228_v57 = vadd.f32 %v227_v51, %v209_v56  ;;  %v231_v61 = vadd.f32 %v230_v58, %v209_v56  ;;  %v2343_v56 = vld [vmem:[%s3495_s4 + $0x2c8] sm:$0xff] }
 0x1a9   :  { %v2248_v59 = vpop.f32.mrf.mxu3 }
 0x1aa   :  { %v233_v60 = vmul.f32 0.2, %v228_v57  ;;  %v234_v1 = vmul.f32 0.2, %v231_v61 }
 0x1ac   :  { %v235_v63 = vmax.f32 %v228_v57, %v233_v60  ;;  %v236_v3 = vmax.f32 %v231_v61, %v234_v1  ;;  %v2350_v61 = vld [vmem:[%s3495_s4 + $0x2c0] sm:$0xff]  ;;  %v2356_v1 = vld [vmem:[%s3495_s4 + $0x2b8] sm:$0xff] }
 0x1ae   :  { %v2256_v0 = vadd.f32 %v235_v63, %v2253_v62  ;;  %v2267_v5 = vadd.f32 %v236_v3, %v2264_v4 }
 0x1b0   :  { %239 = vmax.xlane.f32.xlu0 %v2256_v0 }
 0x1b1   :  { %v2259_v2 = vpop.f32.mrf.mxu3 }
 0x1b8   :  { %241 = vmax.xlane.f32.xlu0 %v2267_v5 }
 0x1b9   :  { %v2270_v6 = vpop.f32.mrf.mxu3 }
 0x1c1   :  { %v2272_v7 = vpop.f32.mrf.mxu3 }
 0x1c9   :  { %v2274_v8 = vpop.f32.mrf.mxu3 }
 0x1d1   :  { %v2276_v9 = vpop.f32.mrf.mxu3 }
 0x1d9   :  { %v2278_v10 = vpop.f32.mrf.mxu3 }
 0x1e1   :  { %v2289_v14 = vpop.f32.mrf.mxu3 }
 0x1e2   :  { %v399_v22 = vmul.f32 %v2289_v14, %v2374_v16 }
 0x1e9   :  { %v370_v19 = vpop.f32.mrf.mxu3 }
 0x1ea   :  { %v400_v18 = vmul.f32 %v370_v19, %v2368_v13  ;;  %v398_v19 = vmul.f32 %v2278_v10, %v2381_v21 }
 0x1f1   :  { %v373_v24 = vpop.f32.mrf.mxu3 }
 0x1f2   :  { %v401_v15 = vmul.f32 %v373_v24, %v2362_v11  ;;  %v2388_v24 = vld [vmem:[%s3495_s4 + $0x290] sm:$0xff] }
 0x1f3   :  { %v397_v14 = vmul.f32 %v2276_v9, %v2388_v24  ;;  %v395_v9 = vmul.f32 %v2272_v7, %v2402_v25 }
 0x1f9   :  { %v376_v48 = vpop.f32.mrf.mxu3 }
 0x1fa   :  { %v402_v12 = vmul.f32 %v376_v48, %v2356_v1 }
 0x201   :  { %v379_v50 = vpop.f32.mrf.mxu3 }
 0x202   :  { %v403_v3 = vmul.f32 %v379_v50, %v2350_v61  ;;  %v394_v50 = vmul.f32 %v2270_v6, %v2410_v47  ;;  %v2431_v6 = vld [vmem:[%s3495_s4 + $0x260] sm:$0xff] }
 0x209   :  { %v382_v51 = vpop.f32.mrf.mxu3 }
 0x20a   :  { %v404_v63 = vmul.f32 %v382_v51, %v2343_v56 }
 0x211   :  { %v385_v52 = vpop.f32.mrf.mxu3 }
 0x212   :  { %v405_v58 = vmul.f32 %v385_v52, %v2333_v54 }
 0x219   :  { %v388_v57 = vpop.f32.mrf.mxu3 }
 0x21a   :  { %v406_v60 = vmul.f32 %v388_v57, %v2338_v55  ;;  %v391_v57 = vmul.f32 %v2246_v53, %v2431_v6  ;;  %v457_v53 = vld [vmem:[%s3495_s4 + $0x100] sm:$0xff] }
 0x21c   :  { %408 = vmatpush.msra.mxu1 %v406_v60  ;;  %v456_v60 = vld [vmem:[%s3495_s4 + $0xf8] sm:$0xff] }
 0x21e   :  { %409 = vmatpush.msra.mxu1 %v405_v58  ;;  %v459_v58 = vld [vmem:[%s3495_s4 + $0x110] sm:$0xff] }
 0x220   :  { %410 = vmatpush.msra.mxu1 %v404_v63  ;;  %v455_v63 = vld [vmem:[%s3495_s4 + $0xf0] sm:$0xff] }
 0x222   :  { %411 = vmatpush.msra.mxu1 %v403_v3 }
 0x223   :  { %v240_v17 = vpop.xlane.xlu0 %239 }
 0x224   :  { %v243_v20 = vsub.f32 %v2256_v0, %v240_v17  ;;  %412 = vmatpush.msra.mxu1 %v402_v12  ;;  %v2395_v0 = vld [vmem:[%s3495_s4 + $0x288] sm:$0xff] }
 0x225   :  { %v396_v10 = vmul.f32 %v2274_v8, %v2395_v0  ;;  %v2424_v8 = vld [vmem:[%s3495_s4 + $0x268] sm:$0xff] }
 0x226   :  { %v245_v23 = vmul.f32 1.442695, %v243_v20  ;;  %413 = vmatpush.msra.mxu1 %v401_v15  ;;  %v392_v52 = vmul.f32 %v2248_v59, %v2424_v8  ;;  %v458_v59 = vld [vmem:[%s3495_s4 + $0x108] sm:$0xff] }
 0x228   :  { %1940 = vpow2.f32 %v245_v23  ;;  %414 = vmatpush.msra.mxu1 %v400_v18 }
 0x22a   :  { %415 = vmatpush.msra.mxu1 %v399_v22 }
 0x22b   :  { %v242_v26 = vpop.xlane.xlu0 %241 }
 0x22c   :  { %v244_v27 = vsub.f32 %v2267_v5, %v242_v26  ;;  %416 = vmatpush.msra.mxu1 %v398_v19  ;;  %v2419_v5 = vld [vmem:[%s3495_s4 + $0x270] sm:$0xff]  ;;  %v454_v19 = vld [vmem:[%s3495_s4 + $0xe8] sm:$0xff]  ;;  %v452_v26 = vld [vmem:[%s3495_s4 + $0xd8] sm:$0xff] }
 0x22d   :  { %v393_v7 = vmul.f32 %v2259_v2, %v2419_v5  ;;  %v460_v2 = vld [vmem:[%s3495_s4 + $0x118] sm:$0xff] }
 0x22e   :  { %v1941_v48 = vpop.eup %1940  ;;  %v247_v49 = vmul.f32 1.442695, %v244_v27  ;;  %417 = vmatpush.msra.mxu1 %v397_v14  ;;  %479 = vmatpush.msra.mxu0 %v460_v2  ;;  %v453_v14 = vld [vmem:[%s3495_s4 + $0xe0] sm:$0xff]  ;;  %v450_v27 = vld [vmem:[%s3495_s4 + $0xc8] sm:$0xff] }
 0x22f   :  { %265 = vmatmul.f32.vlgmr.msrb.gmra.mxu1 %v1941_v48 }
 0x230   :  { %1942 = vpow2.f32 %v247_v49  ;;  %418 = vmatpush.msra.mxu1 %v396_v10  ;;  %480 = vmatpush.msra.mxu0 %v459_v58  ;;  %v451_v10 = vld [vmem:[%s3495_s4 + $0xd0] sm:$0xff] }
 0x231   :  { %v447_v49 = vld [vmem:[%s3495_s4 + $0xb0] sm:$0xff] }
 0x232   :  { %419 = vmatpush.msra.mxu1 %v395_v9  ;;  %481 = vmatpush.msra.mxu0 %v458_v59  ;;  %v448_v9 = vld [vmem:[%s3495_s4 + $0xb8] sm:$0xff] }
 0x234   :  { %420 = vmatpush.msra.mxu1 %v394_v50  ;;  %482 = vmatpush.msra.mxu0 %v457_v53  ;;  %v446_v50 = vld [vmem:[%s3495_s4 + $0xa8] sm:$0xff] }
 0x236   :  { %v1943_v51 = vpop.eup %1942  ;;  %421 = vmatpush.msra.mxu1 %v393_v7  ;;  %483 = vmatpush.msra.mxu0 %v456_v60  ;;  %v445_v7 = vld [vmem:[%s3495_s4 + $0xa0] sm:$0xff] }
 0x237   :  { %268 = vmatmul.f32.gmra.mxu1 %v1943_v51  ;;  %v1935_v60 = vld [vmem:[%s3495_s4 + $0x1c0] ss:$0 sm:$0xff] }
 0x238   :  { %422 = vmatpush.msra.mxu1 %v392_v52  ;;  %484 = vmatpush.msra.mxu0 %v455_v63 }
 0x23a   :  { %423 = vmatpush.msra.mxu1 %v391_v57  ;;  %485 = vmatpush.msra.mxu0 %v454_v19  ;;  %v115_v19 = vadd.f32 %v1935_v60, %v2236_v45  ;;  %v461_v45 = vld [vmem:[%s3495_s4 + $0x120] sm:$0xff] }
 0x23c   :  { %486 = vmatpush.msra.mxu0 %v453_v14 }
 0x23e   :  { %487 = vmatpush.msra.mxu0 %v452_v26 }
 0x240   :  { %488 = vmatpush.msra.mxu0 %v451_v10 }
 0x242   :  { %489 = vmatpush.msra.mxu0 %v450_v27 }
 0x2ac   :  { %v266_v3 = vpop.f32.mrf.mxu1 }
 0x2ad   :  { %v272_v12 = vmax.f32 %v266_v3, 1e-30 }
 0x2af   :  { %1944 = vrcp.f32 %v272_v12 }
 0x2b4   :  { %v269_v15 = vpop.f32.mrf.mxu1 }
 0x2b5   :  { %v1945_v17 = vpop.eup %1944  ;;  %v273_v18 = vmax.f32 %v269_v15, 1e-30 }
 0x2b6   :  { %v276_v20 = vmul.f32 %v1945_v17, %v1941_v48  ;;  %v449_v48 = vld [vmem:[%s3495_s4 + $0xc0] sm:$0xff]  ;;  %v112_v17 = vadd.f32 %v1935_v60, %v2222_v42 }
 0x2b7   :  { %1946 = vrcp.f32 %v273_v18  ;;  %490 = vmatpush.msra.mxu0 %v449_v48  ;;  %v477_v42 = vld [vmem:[%s3495_s4 + $0x1a0] sm:$0xff]  ;;  %v476_v48 = vld [vmem:[%s3495_s4 + $0x198] sm:$0xff] }
 0x2b8   :  { %424 = vmatmul.f32.vlgmr.msra.gmra.mxu1 %v276_v20 }
 0x2b9   :  { %491 = vmatpush.msra.mxu0 %v448_v9  ;;  %v475_v9 = vld [vmem:[%s3495_s4 + $0x190] sm:$0xff] }
 0x2bb   :  { %492 = vmatpush.msra.mxu0 %v447_v49  ;;  %v472_v49 = vld [vmem:[%s3495_s4 + $0x178] sm:$0xff] }
 0x2bd   :  { %v1947_v22 = vpop.eup %1946  ;;  %493 = vmatpush.msra.mxu0 %v446_v50  ;;  %v471_v50 = vld [vmem:[%s3495_s4 + $0x170] sm:$0xff] }
 0x2be   :  { %v277_v23 = vmul.f32 %v1947_v22, %v1943_v51  ;;  %v1936_v51 = vld [vmem:[%s3495_s4 + $0x98] ss:$0 sm:$0xff] }
 0x2bf   :  { %494 = vmatpush.msra.mxu0 %v445_v7  ;;  %v470_v7 = vld [vmem:[%s3495_s4 + $0x168] sm:$0xff] }
 0x2c0   :  { %427 = vmatmul.f32.gmra.mxu1 %v277_v23 }
 0x335   :  { %v425_v52 = vpop.f32.mrf.mxu1 }
 0x336   :  { %v426_v57 = vadd.f32 %v1936_v51, %v425_v52  ;;  %v466_v52 = vld [vmem:[%s3495_s4 + $0x148] sm:$0xff] }
 0x338   :  { %v433_v2 = vmin.f32 %v426_v57, 0.0  ;;  %vm431_vm1 = vcmp.gt.f32.partialorder %v426_v57, 0.0 }
 0x33a   :  { %v435_v58 = vmul.f32 1.442695, %v433_v2  ;;  %v462_v2 = vld [vmem:[%s3495_s4 + $0x128] sm:$0xff] }
 0x33c   :  { %1948 = vpow2.f32 %v435_v58 }
 0x33d   :  { %v428_v59 = vpop.f32.mrf.mxu1 }
 0x33e   :  { %v429_v53 = vadd.f32 %v1936_v51, %v428_v59  ;;  %v467_v51 = vld [vmem:[%s3495_s4 + $0x150] sm:$0xff] }
 0x340   :  { %v434_v63 = vmin.f32 %v429_v53, 0.0  ;;  %vm432_vm2 = vcmp.gt.f32.partialorder %v429_v53, 0.0 }
 0x342   :  { %v1949_v3 = vpop.eup %1948  ;;  %v437_v12 = vmul.f32 1.442695, %v434_v63 }
 0x343   :  { %v1847_v15 = vadd.f32 -1.0, %v1949_v3 }
 0x344   :  { %1950 = vpow2.f32 %v437_v12 }
 0x345   :  { %v441_v18 = vsel %vm431_vm1, %v426_v57, %v1847_v15  ;;  %v463_v57 = vld [vmem:[%s3495_s4 + $0x130] sm:$0xff] }
 0x346   :  { %v2492_v20 = vadd.f32 %v441_v18, %v112_v17 }
 0x348   :  { %495 = vmatmul.f32.vlgmr.msra.gmra.mxu0 %v2492_v20 }
 0x34a   :  { %v1951_v22 = vpop.eup %1950 }
 0x34b   :  { %v1848_v23 = vadd.f32 -1.0, %v1951_v22 }
 0x34d   :  { %v442_v14 = vsel %vm432_vm2, %v429_v53, %v1848_v23 }
 0x34e   :  { %v2496_v26 = vadd.f32 %v442_v14, %v115_v19 }
 0x350   :  { %498 = vmatmul.f32.gmra.mxu0 %v2496_v26 }
 0x3c5   :  { %v496_v10 = vpop.f32.mrf.mxu0 }
 0x3cd   :  { %v499_v27 = vpop.f32.mrf.mxu0 }
 0x3ce   :  { %516 = vmatpush.xpose.msrb.mxu1 %v499_v27  ;;  %634 = vmatpush.msrb.mxu0 %v499_v27 }
 0x3cf   :  { %1930 = vmatpush.msra.mxu3 %v499_v27 }
 0x3d0   :  { %635 = vmatpush.msrb.mxu0 %v496_v10 }
 0x3d1   :  { %1931 = vmatpush.msra.mxu3 %v496_v10  ;;  %1850 = vmatmul.msk.f32.vlgmr.msrb.gmra.mxu0 %vm87_vm0, %v2127_v28  ;;  %v474_v28 = vld [vmem:[%s3495_s4 + $0x188] sm:$0xff] }
 0x3d2   :  { %517 = vmatpush.xpose.msrb.mxu1 %v496_v10  ;;  %1861 = vmatmul.msk.f32.vlgmr.msra.gmra.mxu3 %vm87_vm0, %v2204_v39  ;;  %v473_v39 = vld [vmem:[%s3495_s4 + $0x180] sm:$0xff] }
 0x3d5   :  { %518 = vmatmul.f32.vlgmr.msrb.gmra.mxu1 %v461_v45 }
 0x3d6   :  { %552 = vmatpush.msra.mxu1 %v477_v42 }
 0x3d8   :  { %553 = vmatpush.msra.mxu1 %v476_v48 }
 0x3d9   :  { %1851 = vmatmul.msk.f32.gmra.mxu0 %vm87_vm0, %v2134_v29  ;;  %v469_v29 = vld [vmem:[%s3495_s4 + $0x160] sm:$0xff] }
 0x3da   :  { %554 = vmatpush.msra.mxu1 %v475_v9  ;;  %1862 = vmatmul.msk.f32.gmra.mxu3 %vm87_vm0, %v2211_v40  ;;  %v468_v40 = vld [vmem:[%s3495_s4 + $0x158] sm:$0xff] }
 0x3dc   :  { %555 = vmatpush.msra.mxu1 %v474_v28 }
 0x3de   :  { %556 = vmatpush.msra.mxu1 %v473_v39 }
 0x3e0   :  { %557 = vmatpush.msra.mxu1 %v472_v49 }
 0x3e1   :  { %1852 = vmatmul.msk.f32.gmra.mxu0 %vm87_vm0, %v2141_v30  ;;  %v465_v30 = vld [vmem:[%s3495_s4 + $0x140] sm:$0xff] }
 0x3e2   :  { %558 = vmatpush.msra.mxu1 %v471_v50  ;;  %1863 = vmatmul.msk.f32.gmra.mxu3 %vm87_vm0, %v2218_v41  ;;  %v464_v41 = vld [vmem:[%s3495_s4 + $0x138] sm:$0xff] }
 0x3e4   :  { %559 = vmatpush.msra.mxu1 %v470_v7 }
 0x3e6   :  { %560 = vmatpush.msra.mxu1 %v469_v29 }
 0x3e8   :  { %561 = vmatpush.msra.mxu1 %v468_v40 }
 0x3e9   :  { %1853 = vmatmul.msk.f32.gmra.mxu0 %vm87_vm0, %v2148_v31 }
 0x3ea   :  { %562 = vmatpush.msra.mxu1 %v467_v51  ;;  %1864 = vmatmul.msk.f32.gmra.mxu3 %vm87_vm0, %v2227_v43 }
 0x3ec   :  { %563 = vmatpush.msra.mxu1 %v466_v52 }
 0x3ee   :  { %564 = vmatpush.msra.mxu1 %v465_v30 }
 0x3f0   :  { %565 = vmatpush.msra.mxu1 %v464_v41 }
 0x3f1   :  { %1854 = vmatmul.msk.f32.gmra.mxu0 %vm87_vm0, %v2155_v32 }
 0x3f2   :  { %566 = vmatpush.msra.mxu1 %v463_v57  ;;  %1865 = vmatmul.msk.f32.gmra.mxu3 %vm87_vm0, %v2234_v44 }
 0x3f4   :  { %567 = vmatpush.msra.mxu1 %v462_v2 }
 0x3f5   :  { %568 = vmatmul.f32.vlgmr.msra.gmra.mxu1 %v496_v10 }
 0x3f9   :  { %1855 = vmatmul.msk.f32.gmra.mxu0 %vm87_vm0, %v2162_v33 }
 0x3fd   :  { %571 = vmatmul.f32.gmra.mxu1 %v499_v27 }
 0x401   :  { %1856 = vmatmul.msk.f32.gmra.mxu0 %vm87_vm0, %v2169_v34 }
 0x409   :  { %1857 = vmatmul.msk.f32.gmra.mxu0 %vm87_vm0, %v2176_v35 }
 0x411   :  { %1858 = vmatmul.msk.f32.gmra.mxu0 %vm87_vm0, %v2183_v36 }
 0x419   :  { %1859 = vmatmul.msk.f32.gmra.mxu0 %vm87_vm0, %v2190_v37 }
 0x421   :  { %1860 = vmatmul.msk.f32.gmra.mxu0 %vm87_vm0, %v2197_v38 }
 0x452   :  { %v519_v31 = vpop.f32.mrf.mxu1 }
 0x453   :  { %1849 = vmatmul.msk.f32.vlgmr.msrb.gmra.mxu2 %vm87_vm0, %v519_v31 }
 0x455   :  { %v670_v14 = vpop.f32.mrf.mxu3 }
 0x456   :  { %v696_v29 = vmul.f32 %v670_v14, %v2356_v1  ;;  %v798_v14 = vld [vmem:[%s3496_s5 + $0x90] sm:$0xff] }
 0x45d   :  { %v673_v27 = vpop.f32.mrf.mxu3 }
 0x45e   :  { %v697_v7 = vmul.f32 %v673_v27, %v2350_v61  ;;  %v747_v27 = vld [vmem:[%s3494_s3 + $0x48] sm:$0xff] }
 0x465   :  { %v676_v45 = vpop.f32.mrf.mxu3 }
 0x466   :  { %v698_v50 = vmul.f32 %v676_v45, %v2343_v56  ;;  %v797_v45 = vld [vmem:[%s3496_s5 + $0x88] sm:$0xff] }
 0x46d   :  { %v679_v9 = vpop.f32.mrf.mxu3 }
 0x46e   :  { %v699_v49 = vmul.f32 %v679_v9, %v2333_v54  ;;  %v794_v9 = vld [vmem:[%s3496_s5 + $0x70] sm:$0xff] }
 0x472   :  { %v569_v44 = vpop.f32.mrf.mxu1 }
 0x47a   :  { %v572_v60 = vpop.f32.mrf.mxu1 }
 0x4d6   :  { %v542_v32 = vpop.f32.mrf.mxu2 }
 0x4d7   :  { %v545_v33 = vmul.f32 %v542_v32, %v2243_v46  ;;  %v637_v46 = vpop.f32.mrf.mxu0 }
 0x4d9   :  { %v546_v43 = vrot.slane %v545_v33, 4 }
 0x4db   :  { %v547_v34 = vadd.f32 %v546_v43, %v545_v33  ;;  %v809_v33 = vld [vmem:[%s3496_s5 + $0xe8] sm:$0xff]  ;;  %v752_v43 = vld [vmem:[%s3494_s3 + $0x70] sm:$0xff] }
 0x4dd   :  { %v548_v58 = vrot.slane %v547_v34, 2 }
 0x4df   :  { %v549_v35 = vadd.f32 %v548_v58, %v547_v34  ;;  %v640_v18 = vpop.f32.mrf.mxu0  ;;  %v806_v34 = vld [vmem:[%s3496_s5 + $0xd0] sm:$0xff]  ;;  %v751_v58 = vld [vmem:[%s3494_s3 + $0x68] sm:$0xff] }
 0x4e1   :  { %v550_v59 = vrot.slane %v549_v35, 1 }
 0x4e3   :  { %v551_v53 = vadd.f32 %v550_v59, %v549_v35  ;;  %v804_v35 = vld [vmem:[%s3496_s5 + $0xc0] sm:$0xff]  ;;  %v805_v59 = vld [vmem:[%s3496_s5 + $0xc8] sm:$0xff] }
 0x4e5   :  { %v570_v36 = vadd.f32 %v569_v44, %v551_v53  ;;  %v573_v37 = vadd.f32 %v572_v60, %v551_v53  ;;  %v807_v44 = vld [vmem:[%s3496_s5 + $0xd8] sm:$0xff]  ;;  %v750_v53 = vld [vmem:[%s3494_s3 + $0x60] sm:$0xff] }
 0x4e6   :  { %v803_v60 = vld [vmem:[%s3496_s5 + $0xb8] sm:$0xff] }
 0x4e7   :  { %v575_v63 = vmul.f32 0.2, %v570_v36  ;;  %v576_v12 = vmul.f32 0.2, %v573_v37  ;;  %v643_v22 = vpop.f32.mrf.mxu0 }
 0x4e9   :  { %v577_v3 = vmax.f32 %v570_v36, %v575_v63  ;;  %v578_v15 = vmax.f32 %v573_v37, %v576_v12  ;;  %v802_v36 = vld [vmem:[%s3496_s5 + $0xb0] sm:$0xff]  ;;  %v749_v63 = vld [vmem:[%s3494_s3 + $0x58] sm:$0xff]  ;;  %v800_v37 = vld [vmem:[%s3496_s5 + $0xa0] sm:$0xff] }
 0x4eb   :  { %v579_v38 = vadd.f32 %v577_v3, %v2253_v62  ;;  %v580_v17 = vadd.f32 %v578_v15, %v2264_v4  ;;  %v682_v62 = vpop.f32.mrf.mxu3  ;;  %v801_v3 = vld [vmem:[%s3496_s5 + $0xa8] sm:$0xff] }
 0x4ec   :  { %v700_v4 = vmul.f32 %v682_v62, %v2338_v55  ;;  %v745_v62 = vld [vmem:[%s3494_s3 + $0x38] sm:$0xff] }
 0x4ed   :  { %581 = vmax.xlane.f32.xlu1 %v579_v38 }
 0x4ee   :  { %702 = vmatpush.msrb.mxu1 %v700_v4  ;;  %v744_v4 = vld [vmem:[%s3494_s3 + $0x30] sm:$0xff] }
 0x4ef   :  { %v646_v23 = vpop.f32.mrf.mxu0 }
 0x4f0   :  { %703 = vmatpush.msrb.mxu1 %v699_v49  ;;  %v793_v49 = vld [vmem:[%s3496_s5 + $0x68] sm:$0xff] }
 0x4f2   :  { %704 = vmatpush.msrb.mxu1 %v698_v50  ;;  %v790_v50 = vld [vmem:[%s3496_s5 + $0x50] sm:$0xff] }
 0x4f4   :  { %705 = vmatpush.msrb.mxu1 %v697_v7  ;;  %v791_v7 = vld [vmem:[%s3496_s5 + $0x58] sm:$0xff] }
 0x4f5   :  { %583 = vmax.xlane.f32.xlu1 %v580_v17 }
 0x4f6   :  { %706 = vmatpush.msrb.mxu1 %v696_v29  ;;  %v743_v29 = vld [vmem:[%s3494_s3 + $0x28] sm:$0xff] }
 0x4f7   :  { %v649_v19 = vpop.f32.mrf.mxu0 }
 0x4ff   :  { %v652_v10 = vpop.f32.mrf.mxu0 }
 0x500   :  { %v690_v1 = vmul.f32 %v652_v10, %v2395_v0  ;;  %v685_v0 = vmul.f32 %v637_v46, %v2431_v6  ;;  %v808_v6 = vld [vmem:[%s3496_s5 + $0xe0] sm:$0xff]  ;;  %v799_v10 = vld [vmem:[%s3496_s5 + $0x98] sm:$0xff] }
 0x507   :  { %v655_v42 = vpop.f32.mrf.mxu0 }
 0x508   :  { %v691_v61 = vmul.f32 %v655_v42, %v2388_v24  ;;  %v686_v24 = vmul.f32 %v640_v18, %v2424_v8  ;;  %v753_v8 = vld [vmem:[%s3494_s3 + $0x78] sm:$0xff]  ;;  %v796_v42 = vld [vmem:[%s3496_s5 + $0x80] sm:$0xff] }
 0x50f   :  { %v658_v48 = vpop.f32.mrf.mxu0 }
 0x510   :  { %v692_v41 = vmul.f32 %v658_v48, %v2381_v21  ;;  %v687_v21 = vmul.f32 %v643_v22, %v2419_v5  ;;  %v811_v5 = vld [vmem:[%s3496_s5 + $0xf8] sm:$0xff]  ;;  %v746_v48 = vld [vmem:[%s3494_s3 + $0x40] sm:$0xff] }
 0x517   :  { %v661_v28 = vpop.f32.mrf.mxu0 }
 0x518   :  { %v693_v55 = vmul.f32 %v661_v28, %v2374_v16  ;;  %v688_v16 = vmul.f32 %v646_v23, %v2410_v47  ;;  %v810_v47 = vld [vmem:[%s3496_s5 + $0xf0] sm:$0xff]  ;;  %v795_v28 = vld [vmem:[%s3496_s5 + $0x78] sm:$0xff] }
 0x519   :  { %985 = vmatpush.msrb.mxu3 %v810_v47  ;;  %v887_v47 = vld [vmem:[%s3496_s5 + $0x350] sm:$0xff] }
 0x51b   :  { %986 = vmatpush.msrb.mxu3 %v808_v6 }
 0x51d   :  { %987 = vmatpush.msrb.mxu3 %v806_v34  ;;  %v881_v34 = vld [vmem:[%s3496_s5 + $0x320] sm:$0xff] }
 0x51f   :  { %v664_v39 = vpop.f32.mrf.mxu0  ;;  %988 = vmatpush.msrb.mxu3 %v804_v35 }
 0x520   :  { %v694_v30 = vmul.f32 %v664_v39, %v2368_v13  ;;  %v689_v13 = vmul.f32 %v649_v19, %v2402_v25  ;;  %v754_v25 = vld [vmem:[%s3494_s3 + $0x80] sm:$0xff]  ;;  %v748_v19 = vld [vmem:[%s3494_s3 + $0x50] sm:$0xff] }
 0x521   :  { %757 = vmatpush.msrb.mxu2 %v754_v25  ;;  %989 = vmatpush.msrb.mxu3 %v802_v36  ;;  %v792_v39 = vld [vmem:[%s3496_s5 + $0x60] sm:$0xff] }
 0x523   :  { %758 = vmatpush.msrb.mxu2 %v753_v8  ;;  %990 = vmatpush.msrb.mxu3 %v800_v37  ;;  %v885_v8 = vld [vmem:[%s3496_s5 + $0x340] sm:$0xff] }
 0x525   :  { %759 = vmatpush.msrb.mxu2 %v752_v43  ;;  %991 = vmatpush.msrb.mxu3 %v798_v14 }
 0x527   :  { %v667_v40 = vpop.f32.mrf.mxu0  ;;  %760 = vmatpush.msrb.mxu2 %v751_v58  ;;  %992 = vmatpush.msrb.mxu3 %v796_v42  ;;  %v879_v58 = vld [vmem:[%s3496_s5 + $0x310] sm:$0xff] }
 0x528   :  { %v695_v51 = vmul.f32 %v667_v40, %v2362_v11  ;;  %v788_v40 = vld [vmem:[%s3496_s5 + $0x40] sm:$0xff]  ;;  %v846_v42 = vld [vmem:[%s3496_s5 + $0x210] sm:$0xff] }
 0x529   :  { %761 = vmatpush.msrb.mxu2 %v750_v53  ;;  %993 = vmatpush.msrb.mxu3 %v794_v9  ;;  %v814_v9 = vld [vmem:[%s3496_s5 + $0x110] sm:$0x3] }
 0x52a   :  { %707 = vmatpush.msrb.mxu1 %v695_v51  ;;  %v789_v51 = vld [vmem:[%s3496_s5 + $0x48] sm:$0xff] }
 0x52b   :  { %762 = vmatpush.msrb.mxu2 %v749_v63  ;;  %994 = vmatpush.msrb.mxu3 %v792_v39  ;;  %v875_v63 = vld [vmem:[%s3496_s5 + $0x2f0] sm:$0xff]  ;;  %v836_v39 = vld [vmem:[%s3496_s5 + $0x1c0] sm:$0xff] }
 0x52c   :  { %708 = vmatpush.msrb.mxu1 %v694_v30  ;;  %v786_v30 = vld [vmem:[%s3496_s5 + $0x30] sm:$0xff] }
 0x52d   :  { %763 = vmatpush.msrb.mxu2 %v748_v19  ;;  %995 = vmatpush.msrb.mxu3 %v790_v50  ;;  %v832_v50 = vld [vmem:[%s3496_s5 + $0x1a0] sm:$0xff] }
 0x52e   :  { %709 = vmatpush.msrb.mxu1 %v693_v55  ;;  %v741_v55 = vld [vmem:[%s3494_s3 + $0x18] sm:$0xff] }
 0x52f   :  { %764 = vmatpush.msrb.mxu2 %v747_v27  ;;  %996 = vmatpush.msrb.mxu3 %v788_v40  ;;  %v812_v27 = vld [vmem:[%s3496_s5 + $0x100] sm:$0xff]  ;;  %v826_v40 = vld [vmem:[%s3496_s5 + $0x170] sm:$0xff] }
 0x530   :  { %710 = vmatpush.msrb.mxu1 %v692_v41  ;;  %v785_v41 = vld [vmem:[%s3496_s5 + $0x28] sm:$0xff] }
 0x531   :  { %765 = vmatpush.msrb.mxu2 %v746_v48  ;;  %997 = vmatpush.msrb.mxu3 %v786_v30  ;;  %v842_v48 = vld [vmem:[%s3496_s5 + $0x1f0] sm:$0xff] }
 0x532   :  { %711 = vmatpush.msrb.mxu1 %v691_v61  ;;  %v740_v61 = vld [vmem:[%s3494_s3 + $0x10] sm:$0xff] }
 0x533   :  { %766 = vmatpush.msrb.mxu2 %v745_v62  ;;  %v838_v62 = vld [vmem:[%s3496_s5 + $0x1d0] sm:$0xff] }
 0x534   :  { %712 = vmatpush.msrb.mxu1 %v690_v1  ;;  %v782_v1 = vld [vmem:[%s3496_s5 + $0x10] sm:$0xff] }
 0x535   :  { %767 = vmatpush.msrb.mxu2 %v744_v4  ;;  %v813_v4 = vld [vmem:[%s3496_s5 + $0x108] sm:$0xff]  ;;  %v822_v30 = vld [vmem:[%s3496_s5 + $0x150] sm:$0xff] }
 0x536   :  { %713 = vmatpush.msrb.mxu1 %v689_v13  ;;  %v780_v13 = vld [vmem:[%s3496_s5] sm:$0xff] }
 0x537   :  { %768 = vmatpush.msrb.mxu2 %v743_v29  ;;  %v828_v29 = vld [vmem:[%s3496_s5 + $0x180] sm:$0xff] }
 0x538   :  { %714 = vmatpush.msrb.mxu1 %v688_v16  ;;  %v893_v16 = vld [vmem:[%s3496_s5 + $0x380] sm:$0xff] }
 0x53a   :  { %715 = vmatpush.msrb.mxu1 %v687_v21  ;;  %v1937_v21 = vld [vmem:[%s3495_s4 + $0x1a8] ss:$0 sm:$0xff] }
 0x53c   :  { %716 = vmatpush.msrb.mxu1 %v686_v24  ;;  %v891_v24 = vld [vmem:[%s3496_s5 + $0x370] sm:$0xff] }
 0x53e   :  { %717 = vmatpush.msrb.mxu1 %v685_v0 }
 0x540   :  { %1008 = vmatpush.msra.mxu1 %v811_v5 }
 0x542   :  { %1009 = vmatpush.msra.mxu1 %v809_v33  ;;  %v883_v33 = vld [vmem:[%s3496_s5 + $0x330] sm:$0xff] }
 0x544   :  { %1010 = vmatpush.msra.mxu1 %v807_v44 }
 0x546   :  { %1011 = vmatpush.msra.mxu1 %v805_v59  ;;  %v877_v59 = vld [vmem:[%s3496_s5 + $0x300] sm:$0xff] }
 0x548   :  { %1012 = vmatpush.msra.mxu1 %v803_v60 }
 0x54a   :  { %1013 = vmatpush.msra.mxu1 %v801_v3 }
 0x54c   :  { %1014 = vmatpush.msra.mxu1 %v799_v10 }
 0x54e   :  { %1015 = vmatpush.msra.mxu1 %v797_v45  ;;  %v844_v45 = vld [vmem:[%s3496_s5 + $0x200] sm:$0xff] }
 0x550   :  { %1016 = vmatpush.msra.mxu1 %v795_v28  ;;  %v840_v28 = vld [vmem:[%s3496_s5 + $0x1e0] sm:$0xff] }
 0x552   :  { %1017 = vmatpush.msra.mxu1 %v793_v49  ;;  %v834_v49 = vld [vmem:[%s3496_s5 + $0x1b0] sm:$0xff] }
 0x554   :  { %1018 = vmatpush.msra.mxu1 %v791_v7  ;;  %v830_v7 = vld [vmem:[%s3496_s5 + $0x190] sm:$0xff] }
 0x556   :  { %1019 = vmatpush.msra.mxu1 %v789_v51  ;;  %v815_v51 = vld [vmem:[%s3496_s5 + $0x118] sm:$0x3] }
 0x560   :  { %v582_v52 = vpop.xlane.xlu1 %581 }
 0x561   :  { %v585_v54 = vsub.f32 %v579_v38, %v582_v52  ;;  %v742_v52 = vld [vmem:[%s3494_s3 + $0x20] sm:$0xff] }
 0x562   :  { %769 = vmatpush.msrb.mxu2 %v742_v52  ;;  %v824_v52 = vld [vmem:[%s3496_s5 + $0x160] sm:$0xff] }
 0x563   :  { %v587_v56 = vmul.f32 1.442695, %v585_v54  ;;  %v787_v54 = vld [vmem:[%s3496_s5 + $0x38] sm:$0xff] }
 0x564   :  { %1020 = vmatpush.msra.mxu1 %v787_v54  ;;  %770 = vmatpush.msrb.mxu2 %v741_v55  ;;  %v820_v54 = vld [vmem:[%s3496_s5 + $0x140] sm:$0xff]  ;;  %v818_v55 = vld [vmem:[%s3496_s5 + $0x130] sm:$0xff] }
 0x565   :  { %1952 = vpow2.f32 %v587_v56  ;;  %v784_v56 = vld [vmem:[%s3496_s5 + $0x20] sm:$0xff] }
 0x566   :  { %998 = vmatpush.msrb.mxu3 %v784_v56  ;;  %1021 = vmatpush.msra.mxu1 %v785_v41  ;;  %v816_v56 = vld [vmem:[%s3496_s5 + $0x120] sm:$0xff]  ;;  %v903_v41 = vld [vmem:[%s3496_s5 + $0x3d0] sm:$0xff] }
 0x567   :  { %771 = vmatpush.msrb.mxu2 %v740_v61  ;;  %v901_v61 = vld [vmem:[%s3496_s5 + $0x3c0] sm:$0xff] }
 0x568   :  { %v584_v57 = vpop.xlane.xlu1 %583  ;;  %999 = vmatpush.msrb.mxu3 %v782_v1  ;;  %v899_v1 = vld [vmem:[%s3496_s5 + $0x3b0] sm:$0xff] }
 0x569   :  { %v586_v11 = vsub.f32 %v580_v17, %v584_v57  ;;  %v783_v57 = vld [vmem:[%s3496_s5 + $0x18] sm:$0xff] }
 0x56a   :  { %1022 = vmatpush.msra.mxu1 %v783_v57  ;;  %1000 = vmatpush.msrb.mxu3 %v780_v13  ;;  %v897_v57 = vld [vmem:[%s3496_s5 + $0x3a0] sm:$0xff]  ;;  %v862_v13 = vld [vmem:[%s3496_s5 + $0x288] sm:$0xff] }
 0x56b   :  { %v1953_v2 = vpop.eup %1952  ;;  %v589_v31 = vmul.f32 1.442695, %v586_v11  ;;  %v739_v11 = vld [vmem:[%s3494_s3 + $0x8] sm:$0xff] }
 0x56c   :  { %607 = vmatmul.f32.vlgmr.msra.gmra.mxu2 %v1953_v2 }
 0x56d   :  { %1954 = vpow2.f32 %v589_v31  ;;  %772 = vmatpush.msrb.mxu2 %v739_v11  ;;  %v895_v31 = vld [vmem:[%s3496_s5 + $0x390] sm:$0xff]  ;;  %v864_v11 = vld [vmem:[%s3496_s5 + $0x298] sm:$0xff] }
 0x56e   :  { %1295 = vmatpush.msra.mxu0 %v895_v31  ;;  %v845_v31 = vld [vmem:[%s3496_s5 + $0x208] sm:$0xff] }
 0x570   :  { %1296 = vmatpush.msra.mxu0 %v893_v16  ;;  %v843_v16 = vld [vmem:[%s3496_s5 + $0x1f8] sm:$0xff] }
 0x572   :  { %1297 = vmatpush.msra.mxu0 %v891_v24  ;;  %v839_v24 = vld [vmem:[%s3496_s5 + $0x1d8] sm:$0xff] }
 0x573   :  { %v1955_v32 = vpop.eup %1954 }
 0x574   :  { %610 = vmatmul.f32.gmra.mxu2 %v1955_v32 }
 0x5ef   :  { %v608_v38 = vpop.f32.mrf.mxu2 }
 0x5f0   :  { %v614_v12 = vmax.f32 %v608_v38, 1e-30 }
 0x5f2   :  { %1956 = vrcp.f32 %v614_v12 }
 0x5f7   :  { %v611_v15 = vpop.f32.mrf.mxu2 }
 0x5f8   :  { %v1957_v17 = vpop.eup %1956  ;;  %v615_v46 = vmax.f32 %v611_v15, 1e-30 }
 0x5f9   :  { %v618_v18 = vmul.f32 %v1957_v17, %v1953_v2  ;;  %v781_v2 = vld [vmem:[%s3496_s5 + $0x8] sm:$0xff] }
 0x5fa   :  { %1958 = vrcp.f32 %v615_v46  ;;  %1023 = vmatpush.msra.mxu1 %v781_v2  ;;  %v873_v46 = vld [vmem:[%s3496_s5 + $0x2e0] sm:$0xff]  ;;  %v847_v2 = vld [vmem:[%s3496_s5 + $0x218] sm:$0xff] }
 0x5fb   :  { %718 = vmatmul.f32.vlgmr.msrb.gmra.mxu1 %v618_v18  ;;  %v869_v18 = vld [vmem:[%s3496_s5 + $0x2c0] sm:$0xff] }
 0x5fc   :  { %1133 = vmatpush.msrb.mxu1 %v864_v11 }
 0x5fe   :  { %1134 = vmatpush.msrb.mxu1 %v862_v13 }
 0x600   :  { %v1959_v22 = vpop.eup %1958 }
 0x601   :  { %v619_v23 = vmul.f32 %v1959_v22, %v1955_v32  ;;  %v889_v32 = vld [vmem:[%s3496_s5 + $0x360] sm:$0xff] }
 0x602   :  { %1298 = vmatpush.msra.mxu0 %v889_v32  ;;  %v865_v22 = vld [vmem:[%s3496_s5 + $0x2a0] sm:$0xff] }
 0x603   :  { %721 = vmatmul.f32.gmra.mxu1 %v619_v23 }
 0x604   :  { %1299 = vmatpush.msra.mxu0 %v887_v47  ;;  %v835_v47 = vld [vmem:[%s3496_s5 + $0x1b8] sm:$0xff] }
 0x606   :  { %1300 = vmatpush.msra.mxu0 %v885_v8  ;;  %v833_v8 = vld [vmem:[%s3496_s5 + $0x1a8] sm:$0xff] }
 0x608   :  { %1301 = vmatpush.msra.mxu0 %v883_v33  ;;  %v829_v33 = vld [vmem:[%s3496_s5 + $0x188] sm:$0xff] }
 0x60a   :  { %1302 = vmatpush.msra.mxu0 %v881_v34  ;;  %v827_v34 = vld [vmem:[%s3496_s5 + $0x178] sm:$0xff] }
 0x60c   :  { %1303 = vmatpush.msra.mxu0 %v879_v58  ;;  %v854_v58 = vld [vmem:[%s3496_s5 + $0x250] sm:$0xff] }
 0x60e   :  { %1304 = vmatpush.msra.mxu0 %v877_v59  ;;  %v852_v59 = vld [vmem:[%s3496_s5 + $0x240] sm:$0xff] }
 0x610   :  { %1305 = vmatpush.msra.mxu0 %v875_v63 }
 0x612   :  { %1306 = vmatpush.msra.mxu0 %v873_v46  ;;  %v853_v46 = vld [vmem:[%s3496_s5 + $0x248] sm:$0xff] }
 0x678   :  { %v719_v0 = vpop.f32.mrf.mxu1 }
 0x679   :  { %v720_v25 = vadd.f32 %v1937_v21, %v719_v0  ;;  %v837_v0 = vld [vmem:[%s3496_s5 + $0x1c8] sm:$0xff] }
 0x67b   :  { %v727_v5 = vmin.f32 %v720_v25, 0.0  ;;  %vm725_vm3 = vcmp.gt.f32.partialorder %v720_v25, 0.0 }
 0x67d   :  { %v729_v6 = vmul.f32 1.442695, %v727_v5  ;;  %v861_v5 = vld [vmem:[%s3496_s5 + $0x280] sm:$0xff] }
 0x67f   :  { %1960 = vpow2.f32 %v729_v6  ;;  %v831_v6 = vld [vmem:[%s3496_s5 + $0x198] sm:$0xff] }
 0x680   :  { %v722_v43 = vpop.f32.mrf.mxu1 }
 0x681   :  { %v723_v44 = vadd.f32 %v1937_v21, %v722_v43  ;;  %v841_v21 = vld [vmem:[%s3496_s5 + $0x1e8] sm:$0xff] }
 0x683   :  { %v728_v35 = vmin.f32 %v723_v44, 0.0  ;;  %vm726_vm4 = vcmp.gt.f32.partialorder %v723_v44, 0.0 }
 0x685   :  { %v1961_v53 = vpop.eup %1960  ;;  %v731_v36 = vmul.f32 1.442695, %v728_v35  ;;  %v823_v35 = vld [vmem:[%s3496_s5 + $0x158] sm:$0xff] }
 0x686   :  { %v1866_v60 = vadd.f32 -1.0, %v1961_v53  ;;  %v821_v53 = vld [vmem:[%s3496_s5 + $0x148] sm:$0xff] }
 0x687   :  { %1962 = vpow2.f32 %v731_v36  ;;  %v850_v36 = vld [vmem:[%s3496_s5 + $0x230] sm:$0xff] }
 0x688   :  { %v735_v37 = vsel %vm725_vm3, %v720_v25, %v1866_v60  ;;  %v863_v25 = vld [vmem:[%s3496_s5 + $0x290] sm:$0xff]  ;;  %v819_v60 = vld [vmem:[%s3496_s5 + $0x138] sm:$0xff] }
 0x689   :  { %v737_v3 = vadd.f32 %v735_v37, %v2492_v20  ;;  %v871_v20 = vld [vmem:[%s3496_s5 + $0x2d0] sm:$0xff]  ;;  %1110 = vmatpush.msra.mxu3 %v863_v25  ;;  %v848_v37 = vld [vmem:[%s3496_s5 + $0x220] sm:$0xff] }
 0x68a   :  { %1307 = vmatpush.msra.mxu0 %v871_v20  ;;  %v851_v20 = vld [vmem:[%s3496_s5 + $0x238] sm:$0xff] }
 0x68b   :  { %773 = vmatmul.f32.vlgmr.msrb.gmra.mxu2 %v737_v3  ;;  %1001 = vmatmul.f32.vlgmr.msrb.gmra.mxu3 %v737_v3 }
 0x68c   :  { %1024 = vmatmul.f32.vlgmr.msra.gmra.mxu1 %v737_v3  ;;  %1308 = vmatpush.msra.mxu0 %v869_v18  ;;  %v817_v3 = vld [vmem:[%s3496_s5 + $0x128] sm:$0xff] }
 0x68d   :  { %v1963_v38 = vpop.eup %1962  ;;  %1211 = vmatpush.msra.mxu1 %v847_v2  ;;  %1111 = vmatpush.msra.mxu3 %v861_v5  ;;  %v849_v18 = vld [vmem:[%s3496_s5 + $0x228] sm:$0xff]  ;;  %v892_v2 = vld [vmem:[%s3496_s5 + $0x378] sm:$0xff] }
 0x68e   :  { %v1867_v12 = vadd.f32 -1.0, %v1963_v38 }
 0x68f   :  { %1212 = vmatpush.msra.mxu1 %v845_v31  ;;  %1200 = vmatpush.msrb.mxu3 %v854_v58 }
 0x690   :  { %v736_v15 = vsel %vm726_vm4, %v723_v44, %v1867_v12  ;;  %v825_v44 = vld [vmem:[%s3496_s5 + $0x168] sm:$0xff] }
 0x691   :  { %v738_v17 = vadd.f32 %v736_v15, %v2496_v26  ;;  %v867_v26 = vld [vmem:[%s3496_s5 + $0x2b0] sm:$0xff]  ;;  %1213 = vmatpush.msra.mxu1 %v843_v16  ;;  %1201 = vmatpush.msrb.mxu3 %v852_v59 }
 0x692   :  { %1309 = vmatpush.msra.mxu0 %v867_v26 }
 0x693   :  { %776 = vmatmul.f32.gmra.mxu2 %v738_v17  ;;  %1004 = vmatmul.f32.gmra.mxu3 %v738_v17 }
 0x694   :  { %1027 = vmatmul.f32.gmra.mxu1 %v738_v17  ;;  %1310 = vmatpush.msra.mxu0 %v865_v22  ;;  %v855_v17 = vld [vmem:[%s3496_s5 + $0x258] sm:$0xff] }
 0x695   :  { %1214 = vmatpush.msra.mxu1 %v841_v21  ;;  %1202 = vmatpush.msrb.mxu3 %v850_v36 }
 0x697   :  { %1215 = vmatpush.msra.mxu1 %v839_v24  ;;  %1203 = vmatpush.msrb.mxu3 %v848_v37  ;;  %v890_v24 = vld [vmem:[%s3496_s5 + $0x368] sm:$0xff] }
 0x699   :  { %1216 = vmatpush.msra.mxu1 %v837_v0 }
 0x69b   :  { %1217 = vmatpush.msra.mxu1 %v835_v47  ;;  %v888_v47 = vld [vmem:[%s3496_s5 + $0x358] sm:$0xff] }
 0x69d   :  { %1218 = vmatpush.msra.mxu1 %v833_v8 }
 0x69f   :  { %1219 = vmatpush.msra.mxu1 %v831_v6  ;;  %v886_v6 = vld [vmem:[%s3496_s5 + $0x348] sm:$0xff] }
 0x6a1   :  { %1220 = vmatpush.msra.mxu1 %v829_v33  ;;  %v884_v33 = vld [vmem:[%s3496_s5 + $0x338] sm:$0xff] }
 0x6a3   :  { %1221 = vmatpush.msra.mxu1 %v827_v34 }
 0x6a5   :  { %1222 = vmatpush.msra.mxu1 %v825_v44 }
 0x6a7   :  { %1223 = vmatpush.msra.mxu1 %v823_v35 }
 0x6a9   :  { %1224 = vmatpush.msra.mxu1 %v821_v53  ;;  %v882_v53 = vld [vmem:[%s3496_s5 + $0x328] sm:$0xff] }
 0x6ab   :  { %1225 = vmatpush.msra.mxu1 %v819_v60  ;;  %v880_v60 = vld [vmem:[%s3496_s5 + $0x318] sm:$0xff] }
 0x6ad   :  { %1226 = vmatpush.msra.mxu1 %v817_v3 }
 0x709   :  { %v2799_v23 = vpop.f32.mrf.mxu1 }
 0x70e   :  { %v2801_v19 = vpop.f32.mrf.mxu3  ;;  %v2917_v32 = vpop.f32.mrf.mxu2 }
 0x711   :  { %v2803_v14 = vpop.f32.mrf.mxu1 }
 0x712   :  { %1550 = vmatpush.msrb.mxu0 %v2803_v14 }
 0x714   :  { %1551 = vmatpush.msrb.mxu0 %v2799_v23 }
 0x716   :  { %v2807_v10 = vpop.f32.mrf.mxu3  ;;  %v2937_v43 = vpop.f32.mrf.mxu2 }
 0x717   :  { %1058 = vmatpush.xpose.msra.mxu2 %v2807_v10 }
 0x71b   :  { %1059 = vmatpush.xpose.msra.mxu2 %v2801_v19 }
 0x71e   :  { %1060 = vmatmul.f32.vlgmr.msra.gmra.mxu2 %v812_v27 }
 0x71f   :  { %1868 = vmatpush.xpose.msk.msrb.mxu2 %vm1031_vm5, %v2803_v14 }
 0x723   :  { %1869 = vmatpush.xpose.msk.msrb.mxu2 %vm1031_vm5, %v2799_v23 }
 0x726   :  { %1063 = vmatmul.f32.gmra.mxu2 %v814_v9 }
 0x727   :  { %1165 = vmatpush.msra.mxu2 %v846_v42  ;;  %v858_v42 = vld [vmem:[%s3496_s5 + $0x268] sm:$0xff] }
 0x729   :  { %1166 = vmatpush.msra.mxu2 %v844_v45 }
 0x72b   :  { %1167 = vmatpush.msra.mxu2 %v842_v48 }
 0x72d   :  { %1168 = vmatpush.msra.mxu2 %v840_v28 }
 0x72e   :  { %1870 = vmatmul.msk.f32.vlgmr.msrb.gmra.mxu2 %vm1031_vm5, %v813_v4 }
 0x72f   :  { %1169 = vmatpush.msra.mxu2 %v838_v62 }
 0x731   :  { %1170 = vmatpush.msra.mxu2 %v836_v39  ;;  %v857_v39 = vld [vmem:[%s3496_s5 + $0x260] sm:$0xff] }
 0x733   :  { %1171 = vmatpush.msra.mxu2 %v834_v49 }
 0x735   :  { %1172 = vmatpush.msra.mxu2 %v832_v50 }
 0x736   :  { %1871 = vmatmul.msk.f32.gmra.mxu2 %vm1031_vm5, %v815_v51 }
 0x737   :  { %1173 = vmatpush.msra.mxu2 %v830_v7 }
 0x739   :  { %1174 = vmatpush.msra.mxu2 %v828_v29 }
 0x73b   :  { %1175 = vmatpush.msra.mxu2 %v826_v40 }
 0x73d   :  { %1176 = vmatpush.msra.mxu2 %v824_v52 }
 0x73f   :  { %1177 = vmatpush.msra.mxu2 %v822_v30 }
 0x741   :  { %1178 = vmatpush.msra.mxu2 %v820_v54 }
 0x743   :  { %1179 = vmatpush.msra.mxu2 %v818_v55 }
 0x745   :  { %1180 = vmatpush.msra.mxu2 %v816_v56 }
 0x746   :  { %1181 = vmatmul.f32.vlgmr.msra.gmra.mxu2 %v2801_v19 }
 0x747   :  { %1330 = vmatpush.msrb.mxu2 %v903_v41 }
 0x749   :  { %1331 = vmatpush.msrb.mxu2 %v901_v61 }
 0x74b   :  { %1332 = vmatpush.msrb.mxu2 %v899_v1  ;;  %v896_v1 = vld [vmem:[%s3496_s5 + $0x398] sm:$0xff] }
 0x74d   :  { %1333 = vmatpush.msrb.mxu2 %v897_v57  ;;  %v894_v57 = vld [vmem:[%s3496_s5 + $0x388] sm:$0xff] }
 0x74e   :  { %1184 = vmatmul.f32.gmra.mxu2 %v2807_v10 }
 0x74f   :  { %1473 = vmatpush.msra.mxu2 %v2807_v10 }
 0x751   :  { %1474 = vmatpush.msra.mxu2 %v2801_v19 }
 0x7a1   :  { %v1061_v63 = vpop.f32.mrf.mxu2 }
 0x7a9   :  { %v1064_v38 = vpop.f32.mrf.mxu2 }
 0x7b1   :  { %v1084_v12 = vpop.f32.mrf.mxu2 }
 0x7b2   :  { %v1085_v15 = vadd.f32 %v1084_v12, %v1061_v63  ;;  %v29_v12 = vld [vmem:[%s3493_s2 + $0x8] sm:$0xff] }
 0x7b4   :  { %1872 = vmatmul.msk.f32.vlgmr.msra.gmra.mxu3 %vm87_vm0, %v1085_v15  ;;  %1874 = vmatmul.msk.f32.vlgmr.msrb.gmra.mxu1 %vm87_vm0, %v1085_v15  ;;  %v878_v15 = vld [vmem:[%s3496_s5 + $0x308] sm:$0xff] }
 0x7b5   :  { %1246 = vmatpush.msra.mxu3 %v855_v17 }
 0x7b7   :  { %1247 = vmatpush.msra.mxu3 %v853_v46  ;;  %v28_v46 = vld [vmem:[%s3493_s2] sm:$0xff] }
 0x7b9   :  { %v1087_v26 = vpop.f32.mrf.mxu2  ;;  %1248 = vmatpush.msra.mxu3 %v851_v20 }
 0x7ba   :  { %v1088_v22 = vadd.f32 %v1087_v26, %v1064_v38 }
 0x7bb   :  { %1249 = vmatpush.msra.mxu3 %v849_v18 }
 0x7bc   :  { %1873 = vmatmul.msk.f32.gmra.mxu3 %vm87_vm0, %v1088_v22  ;;  %1875 = vmatmul.msk.f32.gmra.mxu1 %vm87_vm0, %v1088_v22 }
 0x7c4   :  { %1876 = vmatmul.msk.f32.vlgmr.msrb.gmra.mxu3 %vm1031_vm5, %v2799_v23  ;;  %1227 = vmatmul.f32.vlgmr.msra.gmra.mxu1 %v2801_v19  ;;  %v860_v19 = vld [vmem:[%s3496_s5 + $0x278] sm:$0x3] }
 0x7c5   :  { %1341 = vmatpush.msrb.mxu3 %v896_v1 }
 0x7c7   :  { %1342 = vmatpush.msrb.mxu3 %v894_v57 }
 0x7c9   :  { %v1182_v11 = vpop.f32.mrf.mxu2  ;;  %1343 = vmatpush.msrb.mxu3 %v892_v2 }
 0x7cb   :  { %1344 = vmatpush.msrb.mxu3 %v890_v24 }
 0x7cc   :  { %1877 = vmatmul.msk.f32.gmra.mxu3 %vm1031_vm5, %v2803_v14  ;;  %1230 = vmatmul.f32.gmra.mxu1 %v2807_v10 }
 0x7cd   :  { %1345 = vmatpush.msrb.mxu3 %v888_v47  ;;  %v905_v47 = vld [vmem:[%s3494_s3 + $0x110] sm:$0xff] }
 0x7cf   :  { %1346 = vmatpush.msrb.mxu3 %v886_v6  ;;  %v908_v6 = vld [vmem:[%s3494_s3 + $0x128] sm:$0xff] }
 0x7d1   :  { %v1185_v34 = vpop.f32.mrf.mxu2  ;;  %1347 = vmatpush.msrb.mxu3 %v884_v33  ;;  %v909_v33 = vld [vmem:[%s3494_s3 + $0x130] sm:$0xff] }
 0x7d3   :  { %1348 = vmatpush.msrb.mxu3 %v882_v53  ;;  %v915_v53 = vld [vmem:[%s3494_s3 + $0x160] sm:$0xff] }
 0x7d4   :  { %1878 = vmatmul.msk.f32.vlgmr.msra.gmra.mxu3 %vm1031_vm5, %v2799_v23 }
 0x7d5   :  { %1349 = vmatpush.msrb.mxu3 %v880_v60  ;;  %v917_v60 = vld [vmem:[%s3494_s3 + $0x170] sm:$0xff] }
 0x7d7   :  { %1350 = vmatpush.msrb.mxu3 %v878_v15 }
 0x7dc   :  { %1879 = vmatmul.msk.f32.gmra.mxu3 %vm1031_vm5, %v2803_v14  ;;  %v859_v14 = vld [vmem:[%s3496_s5 + $0x270] sm:$0x3] }
 0x831   :  { %v1136_v27 = vpop.f32.mrf.mxu1 }
 0x832   :  { %v1143_v48 = vmul.f32 %v1136_v27, %v858_v42 }
 0x834   :  { %v1155_v28 = vsel %vm1031_vm5, %v1143_v48, 0.0 }
 0x837   :  { %v1113_v45 = vpop.f32.mrf.mxu3 }
 0x838   :  { %v1142_v7 = vmul.f32 %v1113_v45, %v857_v39 }
 0x839   :  { %v1139_v9 = vpop.f32.mrf.mxu1 }
 0x83a   :  { %v1145_v10 = vmul.f32 %v1139_v9, %v860_v19 }
 0x83c   :  { %v1157_v23 = vsel %vm1156_vm6, %v1145_v10, 0.0  ;;  %v31_v10 = vld [vmem:[%s3493_s2 + $0x18] sm:$0xff] }
 0x83d   :  { %v1158_v62 = vadd.f32 %v1157_v23, %v1155_v28  ;;  %v30_v23 = vld [vmem:[%s3493_s2 + $0x10] sm:$0xff] }
 0x83f   :  { %v1159_v49 = vrot.slane %v1158_v62, 4  ;;  %v1116_v4 = vpop.f32.mrf.mxu3 }
 0x840   :  { %v1144_v50 = vmul.f32 %v1116_v4, %v859_v14  ;;  %v876_v4 = vld [vmem:[%s3496_s5 + $0x2f8] sm:$0xff] }
 0x841   :  { %v1160_v29 = vadd.f32 %v1159_v49, %v1158_v62  ;;  %v1228_v0 = vpop.f32.mrf.mxu1  ;;  %1351 = vmatpush.msrb.mxu3 %v876_v4 }
 0x842   :  { %v1147_v40 = vsel %vm1146_vm7, %v1144_v50, 0.0  ;;  %v874_v50 = vld [vmem:[%s3496_s5 + $0x2e8] sm:$0xff] }
 0x843   :  { %v1148_v51 = vadd.f32 %v1147_v40, %v1142_v7  ;;  %v1161_v30 = vrot.slane %v1160_v29, 2  ;;  %1352 = vmatpush.msrb.mxu3 %v874_v50  ;;  %v872_v7 = vld [vmem:[%s3496_s5 + $0x2d8] sm:$0xff]  ;;  %v870_v40 = vld [vmem:[%s3496_s5 + $0x2c8] sm:$0xff] }
 0x845   :  { %v1149_v52 = vrot.slane %v1148_v51, 4  ;;  %v1162_v41 = vadd.f32 %v1161_v30, %v1160_v29  ;;  %v904_v29 = vld [vmem:[%s3496_s5 + $0x3d8] sm:$0xff]  ;;  %1353 = vmatpush.msrb.mxu3 %v872_v7 }
 0x846   :  { %1376 = vmatpush.msrb.mxu1 %v904_v29  ;;  %v900_v30 = vld [vmem:[%s3496_s5 + $0x3b8] sm:$0xff] }
 0x847   :  { %v1150_v54 = vadd.f32 %v1149_v52, %v1148_v51  ;;  %v1205_v55 = vpop.f32.mrf.mxu3  ;;  %v1163_v31 = vrot.slane %v1162_v41, 1  ;;  %v902_v51 = vld [vmem:[%s3496_s5 + $0x3c8] sm:$0xff]  ;;  %1354 = vmatpush.msrb.mxu3 %v870_v40  ;;  %v868_v52 = vld [vmem:[%s3496_s5 + $0x2b8] sm:$0xff] }
 0x848   :  { %1377 = vmatpush.msrb.mxu1 %v902_v51 }
 0x849   :  { %v1151_v56 = vrot.slane %v1150_v54, 2  ;;  %v1164_v5 = vadd.f32 %v1163_v31, %v1162_v41  ;;  %v1231_v3 = vpop.f32.mrf.mxu1  ;;  %1355 = vmatpush.msrb.mxu3 %v868_v52 }
 0x84a   :  { %1378 = vmatpush.msrb.mxu1 %v900_v30 }
 0x84b   :  { %v1152_v61 = vadd.f32 %v1151_v56, %v1150_v54  ;;  %v1229_v44 = vadd.f32 %v1228_v0, %v1164_v5  ;;  %v1232_v20 = vadd.f32 %v1231_v3, %v1164_v5  ;;  %v866_v54 = vld [vmem:[%s3496_s5 + $0x2a8] sm:$0xff]  ;;  %v906_v5 = vld [vmem:[%s3494_s3 + $0x118] sm:$0xff]  ;;  %v919_v3 = vld [vmem:[%s3494_s3 + $0x180] sm:$0xff] }
 0x84c   :  { %1356 = vmatpush.msrb.mxu3 %v866_v54 }
 0x84d   :  { %v1153_v13 = vrot.slane %v1152_v61, 1 }
 0x84f   :  { %v1154_v16 = vadd.f32 %v1153_v13, %v1152_v61  ;;  %v1208_v21 = vpop.f32.mrf.mxu3 }
 0x851   :  { %v1183_v25 = vadd.f32 %v1182_v11, %v1154_v16  ;;  %v1186_v35 = vadd.f32 %v1185_v34, %v1154_v16  ;;  %v910_v34 = vld [vmem:[%s3494_s3 + $0x138] sm:$0xff] }
 0x853   :  { %v1206_v8 = vadd.f32 %v1205_v55, %v1183_v25  ;;  %v1209_v38 = vadd.f32 %v1208_v21, %v1186_v35  ;;  %v898_v55 = vld [vmem:[%s3496_s5 + $0x3a8] sm:$0xff]  ;;  %v913_v35 = vld [vmem:[%s3494_s3 + $0x150] sm:$0xff] }
 0x854   :  { %1379 = vmatpush.msrb.mxu1 %v898_v55 }
 0x855   :  { %v1257_v58 = vmul.f32 0.2, %v1206_v8  ;;  %v1259_v26 = vmul.f32 0.2, %v1209_v38 }
 0x857   :  { %v1251_v59 = vpop.f32.mrf.mxu3  ;;  %v1261_v37 = vmax.f32 %v1206_v8, %v1257_v58  ;;  %v1263_v9 = vmax.f32 %v1209_v38, %v1259_v26  ;;  %v907_v8 = vld [vmem:[%s3494_s3 + $0x120] sm:$0xff]  ;;  %v912_v58 = vld [vmem:[%s3494_s3 + $0x148] sm:$0xff]  ;;  %v921_v26 = vld [vmem:[%s3494_s3 + $0x190] sm:$0xff] }
 0x858   :  { %v1252_v36 = vadd.f32 %v1251_v59, %v1229_v44  ;;  %v911_v44 = vld [vmem:[%s3494_s3 + $0x140] sm:$0xff]  ;;  %v914_v59 = vld [vmem:[%s3494_s3 + $0x158] sm:$0xff] }
 0x859   :  { %v1265_v27 = vadd.f32 %v1261_v37, %v28_v46  ;;  %v1267_v14 = vadd.f32 %v1263_v9, %v30_v23 }
 0x85a   :  { %v1258_v63 = vmul.f32 0.2, %v1252_v36 }
 0x85c   :  { %v1262_v17 = vmax.f32 %v1252_v36, %v1258_v63  ;;  %v916_v36 = vld [vmem:[%s3494_s3 + $0x168] sm:$0xff]  ;;  %v918_v63 = vld [vmem:[%s3494_s3 + $0x178] sm:$0xff] }
 0x85e   :  { %v1266_v18 = vadd.f32 %v1262_v17, %v29_v12  ;;  %v920_v17 = vld [vmem:[%s3494_s3 + $0x188] sm:$0xff] }
 0x85f   :  { %v1254_v22 = vpop.f32.mrf.mxu3 }
 0x860   :  { %v1255_v42 = vadd.f32 %v1254_v22, %v1232_v20  ;;  %v1269_v45 = vsel %vm1031_vm5, %v1266_v18, -inf }
 0x861   :  { %v1270_v19 = vmax.f32 %v1265_v27, %v1269_v45 }
 0x862   :  { %v1260_v48 = vmul.f32 0.2, %v1255_v42 }
 0x863   :  { %1271 = vmax.xlane.f32.xlu2 %v1270_v19 }
 0x864   :  { %v1264_v28 = vmax.f32 %v1255_v42, %v1260_v48  ;;  %v922_v42 = vld [vmem:[%s3494_s3 + $0x198] sm:$0xff]  ;;  %v923_v48 = vld [vmem:[%s3494_s3 + $0x1a0] sm:$0xff] }
 0x866   :  { %v1268_v62 = vadd.f32 %v1264_v28, %v31_v10  ;;  %v924_v28 = vld [vmem:[%s3494_s3 + $0x1a8] sm:$0xff] }
 0x868   :  { %v1273_v39 = vsel %vm1031_vm5, %v1268_v62, -inf }
 0x869   :  { %v1274_v49 = vmax.f32 %v1267_v14, %v1273_v39 }
 0x86b   :  { %1275 = vmax.xlane.f32.xlu2 %v1274_v49 }
 0x8d6   :  { %v1272_v56 = vpop.xlane.xlu2 %1271 }
 0x8d7   :  { %v1277_v41 = vsub.f32 %v1265_v27, %v1272_v56  ;;  %v1278_v61 = vsub.f32 %v1266_v18, %v1272_v56 }
 0x8d9   :  { %v1281_v1 = vmul.f32 1.442695, %v1277_v41  ;;  %v1283_v57 = vmul.f32 1.442695, %v1278_v61 }
 0x8db   :  { %1964 = vpow2.f32 %v1281_v1 }
 0x8dc   :  { %1966 = vpow2.f32 %v1283_v57 }
 0x8de   :  { %v1276_v11 = vpop.xlane.xlu2 %1275 }
 0x8df   :  { %v1279_v13 = vsub.f32 %v1267_v14, %v1276_v11  ;;  %v1280_v2 = vsub.f32 %v1268_v62, %v1276_v11 }
 0x8e1   :  { %v3082_v31 = vpop.eup %1964  ;;  %v1285_v16 = vmul.f32 1.442695, %v1279_v13  ;;  %v1287_v21 = vmul.f32 1.442695, %v1280_v2 }
 0x8e2   :  { %v3084_v24 = vpop.eup %1966  ;;  %1311 = vmatmul.f32.vlgmr.msra.gmra.mxu0 %v3082_v31  ;;  %1357 = vmatmul.f32.vlgmr.msrb.gmra.mxu3 %v3082_v31 }
 0x8e3   :  { %1968 = vpow2.f32 %v1285_v16  ;;  %1880 = vmatmul.msk.f32.vlgmr.msrb.gmra.mxu2 %vm1031_vm5, %v3084_v24  ;;  %1882 = vmatmul.msk.f32.vlgmr.msrb.gmra.mxu1 %vm1031_vm5, %v3084_v24 }
 0x8e4   :  { %1970 = vpow2.f32 %v1287_v21  ;;  %v955_v21 = vld [vmem:[%s3496_s5 + $0x4d0] sm:$0xff] }
 0x8e9   :  { %v3092_v0 = vpop.eup %1968 }
 0x8ea   :  { %v3094_v25 = vpop.eup %1970  ;;  %1314 = vmatmul.f32.gmra.mxu0 %v3092_v0  ;;  %1360 = vmatmul.f32.gmra.mxu3 %v3092_v0 }
 0x8eb   :  { %1881 = vmatmul.msk.f32.gmra.mxu2 %vm1031_vm5, %v3094_v25  ;;  %1883 = vmatmul.msk.f32.gmra.mxu1 %vm1031_vm5, %v3094_v25 }
 0x8f2   :  { %1904 = vmatmul.msk.f32.vlgmr.msrb.gmra.mxu0 %vm87_vm0, %v905_v47 }
 0x8f3   :  { %1884 = vmatmul.msk.f32.vlgmr.msra.gmra.mxu2 %vm87_vm0, %v905_v47  ;;  %v953_v47 = vld [vmem:[%s3496_s5 + $0x4c0] sm:$0xff] }
 0x8fa   :  { %1905 = vmatmul.msk.f32.gmra.mxu0 %vm87_vm0, %v906_v5 }
 0x8fb   :  { %1885 = vmatmul.msk.f32.gmra.mxu2 %vm87_vm0, %v906_v5 }
 0x902   :  { %1906 = vmatmul.msk.f32.gmra.mxu0 %vm87_vm0, %v907_v8 }
 0x903   :  { %1886 = vmatmul.msk.f32.gmra.mxu2 %vm87_vm0, %v907_v8 }
 0x90a   :  { %1907 = vmatmul.msk.f32.gmra.mxu0 %vm87_vm0, %v908_v6 }
 0x90b   :  { %1887 = vmatmul.msk.f32.gmra.mxu2 %vm87_vm0, %v908_v6 }
 0x912   :  { %1908 = vmatmul.msk.f32.gmra.mxu0 %vm87_vm0, %v909_v33 }
 0x913   :  { %1888 = vmatmul.msk.f32.gmra.mxu2 %vm87_vm0, %v909_v33  ;;  %v951_v33 = vld [vmem:[%s3496_s5 + $0x4b0] sm:$0xff] }
 0x91a   :  { %1909 = vmatmul.msk.f32.gmra.mxu0 %vm87_vm0, %v910_v34 }
 0x91b   :  { %1889 = vmatmul.msk.f32.gmra.mxu2 %vm87_vm0, %v910_v34 }
 0x922   :  { %1910 = vmatmul.msk.f32.gmra.mxu0 %vm87_vm0, %v911_v44 }
 0x923   :  { %1890 = vmatmul.msk.f32.gmra.mxu2 %vm87_vm0, %v911_v44  ;;  %v949_v44 = vld [vmem:[%s3496_s5 + $0x4a0] sm:$0xff] }
 0x92a   :  { %1911 = vmatmul.msk.f32.gmra.mxu0 %vm87_vm0, %v912_v58 }
 0x92b   :  { %1891 = vmatmul.msk.f32.gmra.mxu2 %vm87_vm0, %v912_v58 }
 0x932   :  { %1912 = vmatmul.msk.f32.gmra.mxu0 %vm87_vm0, %v913_v35 }
 0x933   :  { %1892 = vmatmul.msk.f32.gmra.mxu2 %vm87_vm0, %v913_v35  ;;  %v947_v35 = vld [vmem:[%s3496_s5 + $0x490] sm:$0xff] }
 0x93a   :  { %1913 = vmatmul.msk.f32.gmra.mxu0 %vm87_vm0, %v914_v59 }
 0x93b   :  { %1893 = vmatmul.msk.f32.gmra.mxu2 %vm87_vm0, %v914_v59 }
 0x942   :  { %1914 = vmatmul.msk.f32.gmra.mxu0 %vm87_vm0, %v915_v53 }
 0x943   :  { %1894 = vmatmul.msk.f32.gmra.mxu2 %vm87_vm0, %v915_v53  ;;  %v945_v53 = vld [vmem:[%s3496_s5 + $0x480] sm:$0xff] }
 0x94a   :  { %1915 = vmatmul.msk.f32.gmra.mxu0 %vm87_vm0, %v916_v36 }
 0x94b   :  { %1895 = vmatmul.msk.f32.gmra.mxu2 %vm87_vm0, %v916_v36 }
 0x952   :  { %1916 = vmatmul.msk.f32.gmra.mxu0 %vm87_vm0, %v917_v60 }
 0x953   :  { %1896 = vmatmul.msk.f32.gmra.mxu2 %vm87_vm0, %v917_v60 }
 0x95a   :  { %1917 = vmatmul.msk.f32.gmra.mxu0 %vm87_vm0, %v918_v63 }
 0x95b   :  { %1897 = vmatmul.msk.f32.gmra.mxu2 %vm87_vm0, %v918_v63 }
 0x95f   :  { %v1312_v37 = vpop.f32.mrf.mxu0 }
 0x962   :  { %1918 = vmatmul.msk.f32.gmra.mxu0 %vm87_vm0, %v919_v3 }
 0x963   :  { %1898 = vmatmul.msk.f32.gmra.mxu2 %vm87_vm0, %v919_v3 }
 0x966   :  { %v1335_v38 = vpop.f32.mrf.mxu2 }
 0x967   :  { %v3177_v12 = vadd.f32 %v1335_v38, %v1312_v37  ;;  %v1315_v15 = vpop.f32.mrf.mxu0  ;;  %v943_v37 = vld [vmem:[%s3496_s5 + $0x470] sm:$0xff]  ;;  %v941_v38 = vld [vmem:[%s3496_s5 + $0x460] sm:$0xff] }
 0x96a   :  { %1919 = vmatmul.msk.f32.gmra.mxu0 %vm87_vm0, %v920_v17 }
 0x96b   :  { %1899 = vmatmul.msk.f32.gmra.mxu2 %vm87_vm0, %v920_v17  ;;  %v939_v17 = vld [vmem:[%s3496_s5 + $0x450] sm:$0xff] }
 0x96e   :  { %v1338_v46 = vpop.f32.mrf.mxu2 }
 0x96f   :  { %v3184_v20 = vadd.f32 %v1338_v46, %v1315_v15  ;;  %v3186_v18 = vpop.f32.mrf.mxu0 }
 0x972   :  { %1920 = vmatmul.msk.f32.gmra.mxu0 %vm87_vm0, %v921_v26 }
 0x973   :  { %1900 = vmatmul.msk.f32.gmra.mxu2 %vm87_vm0, %v921_v26  ;;  %v937_v26 = vld [vmem:[%s3496_s5 + $0x440] sm:$0xff] }
 0x976   :  { %v3193_v22 = vpop.f32.mrf.mxu2 }
 0x977   :  { %v3195_v27 = vpop.f32.mrf.mxu0 }
 0x97a   :  { %1921 = vmatmul.msk.f32.gmra.mxu0 %vm87_vm0, %v922_v42 }
 0x97b   :  { %1901 = vmatmul.msk.f32.gmra.mxu2 %vm87_vm0, %v922_v42 }
 0x97e   :  { %v3202_v45 = vpop.f32.mrf.mxu2 }
 0x97f   :  { %v3204_v19 = vpop.f32.mrf.mxu0 }
 0x982   :  { %1922 = vmatmul.msk.f32.gmra.mxu0 %vm87_vm0, %v923_v48 }
 0x983   :  { %1902 = vmatmul.msk.f32.gmra.mxu2 %vm87_vm0, %v923_v48 }
 0x986   :  { %v3211_v9 = vpop.f32.mrf.mxu2 }
 0x987   :  { %v3213_v10 = vpop.f32.mrf.mxu0 }
 0x98a   :  { %1923 = vmatmul.msk.f32.gmra.mxu0 %vm87_vm0, %v924_v28 }
 0x98b   :  { %1903 = vmatmul.msk.f32.gmra.mxu2 %vm87_vm0, %v924_v28  ;;  %v1358_v28 = vpop.f32.mrf.mxu3 }
 0x98e   :  { %v3220_v23 = vpop.f32.mrf.mxu2 }
 0x98f   :  { %v3222_v62 = vpop.f32.mrf.mxu0 }
 0x996   :  { %v3224_v14 = vpop.f32.mrf.mxu2 }
 0x997   :  { %v3226_v39 = vpop.f32.mrf.mxu0 }
 0x99e   :  { %v1491_v49 = vpop.f32.mrf.mxu2 }
 0x99f   :  { %v3228_v4 = vpop.f32.mrf.mxu0 }
 0x9a6   :  { %v1494_v50 = vpop.f32.mrf.mxu2 }
 0x9a7   :  { %v3230_v7 = vpop.f32.mrf.mxu0 }
 0x9ae   :  { %v1497_v29 = vpop.f32.mrf.mxu2 }
 0x9af   :  { %v3232_v40 = vpop.f32.mrf.mxu0  ;;  %v1627_v48 = vmul.f32 %v1497_v29, %v939_v17  ;;  %v931_v29 = vld [vmem:[%s3496_s5 + $0x410] sm:$0xff] }
 0x9b6   :  { %v1500_v51 = vpop.f32.mrf.mxu2 }
 0x9b7   :  { %v3234_v52 = vpop.f32.mrf.mxu0  ;;  %v1629_v46 = vmul.f32 %v1500_v51, %v941_v38  ;;  %v933_v51 = vld [vmem:[%s3496_s5 + $0x420] sm:$0xff] }
 0x9b8   :  { %v961_v38 = vld [vmem:[%s3496_s5 + $0x500] sm:$0xff] }
 0x9be   :  { %v1503_v30 = vpop.f32.mrf.mxu2 }
 0x9bf   :  { %v3236_v54 = vpop.f32.mrf.mxu0  ;;  %v1631_v15 = vmul.f32 %v1503_v30, %v943_v37 }
 0x9c6   :  { %v1506_v55 = vpop.f32.mrf.mxu2 }
 0x9c7   :  { %v3238_v56 = vpop.f32.mrf.mxu0  ;;  %v1633_v3 = vmul.f32 %v1506_v55, %v945_v53  ;;  %v935_v55 = vld [vmem:[%s3496_s5 + $0x430] sm:$0xff] }
 0x9ce   :  { %v1509_v41 = vpop.f32.mrf.mxu2 }
 0x9cf   :  { %v3240_v61 = vpop.f32.mrf.mxu0  ;;  %v1635_v60 = vmul.f32 %v1509_v41, %v947_v35  ;;  %v1387_v41 = vmax.f32 %v3177_v12, 1e-30  ;;  %v929_v12 = vld [vmem:[%s3496_s5 + $0x400] sm:$0xff] }
 0x9d1   :  { %1972 = vrcp.f32 %v1387_v41 }
 0x9d6   :  { %v1512_v1 = vpop.f32.mrf.mxu2 }
 0x9d7   :  { %v3242_v57 = vpop.f32.mrf.mxu0  ;;  %v1637_v59 = vmul.f32 %v1512_v1, %v949_v44  ;;  %v1625_v1 = vmul.f32 %v1494_v50, %v937_v26  ;;  %v925_v44 = vld [vmem:[%s3496_s5 + $0x3e0] sm:$0xff]  ;;  %v1973_v35 = vpop.eup %1972 }
 0x9d8   :  { %v1613_v37 = vmul.f32 %v3193_v22, %v925_v44  ;;  %v3325_v17 = vmul.f32 %v1973_v35, %v3082_v31  ;;  %v958_v22 = vld [vmem:[%s3496_s5 + $0x4e8] sm:$0xff]  ;;  %v936_v35 = vld [vmem:[%s3496_s5 + $0x438] sm:$0xff] }
 0x9de   :  { %v1515_v11 = vpop.f32.mrf.mxu2 }
 0x9df   :  { %v3244_v13 = vpop.f32.mrf.mxu0  ;;  %v1639_v58 = vmul.f32 %v1515_v11, %v951_v33  ;;  %v1381_v11 = vpop.f32.mrf.mxu1  ;;  %v1389_v33 = vmax.f32 %v3184_v20, 1e-30  ;;  %v962_v20 = vld [vmem:[%s3496_s5 + $0x508] sm:$0xff] }
 0x9e6   :  { %v1518_v2 = vpop.f32.mrf.mxu2 }
 0x9e7   :  { %v3246_v16 = vpop.f32.mrf.mxu0  ;;  %v1641_v34 = vmul.f32 %v1518_v2, %v953_v47  ;;  %v1623_v2 = vmul.f32 %v1491_v49, %v935_v55  ;;  %v1621_v47 = vmul.f32 %v3224_v14, %v933_v51  ;;  %v927_v49 = vld [vmem:[%s3496_s5 + $0x3f0] sm:$0xff]  ;;  %v1361_v14 = vpop.f32.mrf.mxu3 }
 0x9e8   :  { %v1384_v53 = vpop.f32.mrf.mxu1 }
 0x9ee   :  { %v1521_v5 = vpop.f32.mrf.mxu2 }
 0x9ef   :  { %v1643_v8 = vmul.f32 %v1521_v5, %v955_v21  ;;  %v3254_v6 = vpop.f32.mrf.mxu0  ;;  %v1382_v21 = vadd.f32 %v1381_v11, %v1358_v28  ;;  %v1619_v5 = vmul.f32 %v3220_v23, %v931_v29  ;;  %v964_v23 = vld [vmem:[%s3496_s5 + $0x518] sm:$0xff]  ;;  %v954_v29 = vld [vmem:[%s3496_s5 + $0x4c8] sm:$0xff] }
 0x9f0   :  { %v1646_v11 = vmul.f32 %v3254_v6, %v958_v22  ;;  %v965_v22 = vld [vmem:[%s3494_s3 + $0x1b0] sm:$0xff] }
 0x9f1   :  { %1659 = vmatpush.msra.mxu1 %v1643_v8  ;;  %v1388_v8 = vmax.f32 %v1382_v21, 1e-30 }
 0x9f3   :  { %1660 = vmatpush.msra.mxu1 %v1641_v34  ;;  %v1617_v34 = vmul.f32 %v3211_v9, %v929_v12  ;;  %1974 = vrcp.f32 %v1388_v8  ;;  %v963_v9 = vld [vmem:[%s3496_s5 + $0x510] sm:$0xff]  ;;  %v948_v12 = vld [vmem:[%s3496_s5 + $0x498] sm:$0xff] }
 0x9f4   :  { %1976 = vrcp.f32 %v1389_v33  ;;  %v1636_v8 = vmul.f32 %v3238_v56, %v948_v12  ;;  %v942_v56 = vld [vmem:[%s3496_s5 + $0x468] sm:$0xff]  ;;  %v978_v33 = vld [vmem:[%s3494_s3 + $0x218] sm:$0xff] }
 0x9f5   :  { %1661 = vmatpush.msra.mxu1 %v1639_v58  ;;  %v1630_v44 = vmul.f32 %v3232_v40, %v942_v56  ;;  %v975_v40 = vld [vmem:[%s3494_s3 + $0x200] sm:$0xff] }
 0x9f6   :  { %v3268_v36 = vpop.f32.mrf.mxu2 }
 0x9f7   :  { %1662 = vmatpush.msra.mxu1 %v1637_v59  ;;  %v3270_v63 = vpop.f32.mrf.mxu0  ;;  %v1615_v59 = vmul.f32 %v3202_v45, %v927_v49  ;;  %v960_v45 = vld [vmem:[%s3496_s5 + $0x4f8] sm:$0xff]  ;;  %v979_v49 = vld [vmem:[%s3494_s3 + $0x220] sm:$0xff] }
 0x9f8   :  { %v1648_v55 = vmul.f32 %v3270_v63, %v960_v45 }
 0x9f9   :  { %1663 = vmatpush.msra.mxu1 %v1635_v60  ;;  %v1385_v60 = vadd.f32 %v1384_v53, %v1361_v14  ;;  %v1975_v31 = vpop.eup %1974  ;;  %v940_v14 = vld [vmem:[%s3496_s5 + $0x458] sm:$0xff] }
 0x9fa   :  { %v1396_v21 = vmul.f32 %v1975_v31, %v3084_v24  ;;  %v1642_v24 = vmul.f32 %v3244_v13, %v954_v29  ;;  %v946_v13 = vld [vmem:[%s3496_s5 + $0x488] sm:$0xff]  ;;  %v974_v53 = vld [vmem:[%s3494_s3 + $0x1f8] sm:$0xff] }
 0x9fb   :  { %1664 = vmatpush.msra.mxu1 %v1633_v3  ;;  %v1390_v28 = vmax.f32 %v1385_v60, 1e-30  ;;  %v930_v60 = vld [vmem:[%s3496_s5 + $0x408] sm:$0xff] }
 0x9fd   :  { %1665 = vmatpush.msra.mxu1 %v1631_v15  ;;  %1978 = vrcp.f32 %v1390_v28  ;;  %v983_v28 = vld [vmem:[%s3494_s3 + $0x240] sm:$0xff] }
 0x9fe   :  { %v1527_v42 = vpop.f32.mrf.mxu2 }
 0x9ff   :  { %1666 = vmatpush.msra.mxu1 %v1629_v46  ;;  %v1607_v30 = vpop.f32.mrf.mxu0 }
 0xa00   :  { %v1650_v46 = vmul.f32 %v1607_v30, %v962_v20  ;;  %v957_v30 = vld [vmem:[%s3496_s5 + $0x4e0] sm:$0xff]  ;;  %v1624_v20 = vmul.f32 %v3226_v39, %v936_v35  ;;  %v928_v39 = vld [vmem:[%s3496_s5 + $0x3f8] sm:$0xff] }
 0xa01   :  { %1667 = vmatpush.msra.mxu1 %v1627_v48  ;;  %v959_v48 = vld [vmem:[%s3496_s5 + $0x4f0] sm:$0xff]  ;;  %v1645_v63 = vmul.f32 %v3268_v36, %v957_v30  ;;  %v1616_v45 = vmul.f32 %v3195_v27, %v928_v39  ;;  %v971_v27 = vld [vmem:[%s3494_s3 + $0x1e0] sm:$0xff] }
 0xa02   :  { %v1647_v51 = vmul.f32 %v1527_v42, %v959_v48  ;;  %v984_v48 = vld [vmem:[%s3494_s3 + $0x248] sm:$0xff] }
 0xa03   :  { %1668 = vmatpush.msra.mxu1 %v1625_v1  ;;  %v1977_v1 = vpop.eup %1976 }
 0xa04   :  { %v3348_v6 = vmul.f32 %v1977_v1, %v3092_v0  ;;  %v950_v0 = vld [vmem:[%s3496_s5 + $0x4a8] sm:$0xff]  ;;  %v1979_v36 = vpop.eup %1978 }
 0xa05   :  { %1669 = vmatpush.msra.mxu1 %v1623_v2  ;;  %v956_v2 = vld [vmem:[%s3496_s5 + $0x4d8] sm:$0xff] }
 0xa06   :  { %v1530_v50 = vpop.f32.mrf.mxu2  ;;  %v1644_v42 = vmul.f32 %v3246_v16, %v956_v2 }
 0xa07   :  { %1670 = vmatpush.msra.mxu1 %v1621_v47  ;;  %v1610_v58 = vpop.f32.mrf.mxu0  ;;  %v1649_v41 = vmul.f32 %v1530_v50, %v961_v38  ;;  %v952_v47 = vld [vmem:[%s3496_s5 + $0x4b8] sm:$0xff]  ;;  %v1638_v50 = vmul.f32 %v3240_v61, %v950_v0  ;;  %v980_v61 = vld [vmem:[%s3494_s3 + $0x228] sm:$0xff]  ;;  %v1939_v0 = vld [vmem:[%s3494_s3] ss:$0 sm:$0xff] }
 0xa08   :  { %v1652_v3 = vmul.f32 %v1610_v58, %v964_v23  ;;  %v1640_v16 = vmul.f32 %v3242_v57, %v952_v47  ;;  %v944_v57 = vld [vmem:[%s3496_s5 + $0x478] sm:$0xff]  ;;  %v938_v23 = vld [vmem:[%s3496_s5 + $0x448] sm:$0xff]  ;;  %v1628_v58 = vmul.f32 %v3230_v7, %v940_v14 }
 0xa09   :  { %1671 = vmatpush.msra.mxu1 %v1619_v5  ;;  %v1398_v5 = vmul.f32 %v1979_v36, %v3094_v25  ;;  %v1634_v25 = vmul.f32 %v3236_v54, %v946_v13  ;;  %v977_v54 = vld [vmem:[%s3494_s3 + $0x210] sm:$0xff]  ;;  %v934_v7 = vld [vmem:[%s3496_s5 + $0x428] sm:$0xff] }
 0xa0a   :  { %v1938_v36 = vld [vmem:[%s3494_s3 + $0x88] ss:$0 sm:$0xff] }
 0xa0b   :  { %1672 = vmatpush.msra.mxu1 %v1617_v34  ;;  %v1632_v34 = vmul.f32 %v3234_v52, %v944_v57  ;;  %v976_v52 = vld [vmem:[%s3494_s3 + $0x208] sm:$0xff] }
 0xa0d   :  { %1673 = vmatpush.msra.mxu1 %v1615_v59  ;;  %v1626_v59 = vmul.f32 %v3228_v4, %v938_v23  ;;  %v1622_v4 = vmul.f32 %v3222_v62, %v934_v7  ;;  %v926_v62 = vld [vmem:[%s3496_s5 + $0x3e8] sm:$0xff] }
 0xa0e   :  { %v1533_v15 = vpop.f32.mrf.mxu2  ;;  %v1614_v38 = vmul.f32 %v3186_v18, %v926_v62  ;;  %v970_v18 = vld [vmem:[%s3494_s3 + $0x1d8] sm:$0xff] }
 0xa0f   :  { %v1651_v26 = vmul.f32 %v1533_v15, %v963_v9  ;;  %1674 = vmatpush.msra.mxu1 %v1613_v37  ;;  %v932_v9 = vld [vmem:[%s3496_s5 + $0x418] sm:$0xff]  ;;  %v969_v15 = vld [vmem:[%s3494_s3 + $0x1d0] sm:$0xff] }
 0xa10   :  { %1675 = vmatmul.f32.vlgmr.msra.gmra.mxu1 %v3325_v17  ;;  %v1620_v37 = vmul.f32 %v3213_v10, %v932_v9  ;;  %v972_v10 = vld [vmem:[%s3494_s3 + $0x1e8] sm:$0xff] }
 0xa11   :  { %1740 = vmatpush.msrb.mxu1 %v1652_v3  ;;  %1694 = vmatpush.msra.mxu3 %v1651_v26  ;;  %v1618_v3 = vmul.f32 %v3204_v19, %v930_v60  ;;  %v973_v19 = vld [vmem:[%s3494_s3 + $0x1f0] sm:$0xff]  ;;  %v966_v26 = vld [vmem:[%s3494_s3 + $0x1b8] sm:$0xff] }
 0xa13   :  { %1741 = vmatpush.msrb.mxu1 %v1650_v46  ;;  %1695 = vmatpush.msra.mxu3 %v1649_v41  ;;  %v967_v46 = vld [vmem:[%s3494_s3 + $0x1c0] sm:$0xff]  ;;  %v981_v41 = vld [vmem:[%s3494_s3 + $0x230] sm:$0xff] }
 0xa15   :  { %1742 = vmatpush.msrb.mxu1 %v1648_v55  ;;  %1696 = vmatpush.msra.mxu3 %v1647_v51  ;;  %v982_v55 = vld [vmem:[%s3494_s3 + $0x238] sm:$0xff] }
 0xa17   :  { %1743 = vmatpush.msrb.mxu1 %v1646_v11  ;;  %1697 = vmatpush.msra.mxu3 %v1645_v63 }
 0xa18   :  { %1678 = vmatmul.f32.gmra.mxu1 %v3348_v6  ;;  %1924 = vmatmul.msk.f32.vlgmr.msra.gmra.mxu3 %vm1031_vm5, %v1396_v21 }
 0xa19   :  { %1705 = vmatpush.msrb.mxu3 %v1644_v42  ;;  %1758 = vmatpush.msra.mxu1 %v980_v61 }
 0xa1b   :  { %1706 = vmatpush.msrb.mxu3 %v1642_v24  ;;  %1759 = vmatpush.msra.mxu1 %v979_v49  ;;  %v778_v49 = vadd.f32 %v1938_v36, %v2937_v43 }
 0xa1d   :  { %1707 = vmatpush.msrb.mxu3 %v1640_v16  ;;  %1760 = vmatpush.msra.mxu1 %v978_v33 }
 0xa1f   :  { %1708 = vmatpush.msrb.mxu3 %v1638_v50  ;;  %1761 = vmatpush.msra.mxu1 %v977_v54  ;;  %v775_v50 = vadd.f32 %v1938_v36, %v2917_v32 }
 0xa20   :  { %1925 = vmatmul.msk.f32.gmra.mxu3 %vm1031_vm5, %v1398_v5  ;;  %1926 = vmatmul.msk.f32.vlgmr.msrb.gmra.mxu1 %vm1031_vm5, %v1396_v21 }
 0xa21   :  { %1709 = vmatpush.msrb.mxu3 %v1636_v8  ;;  %1762 = vmatpush.msra.mxu1 %v976_v52 }
 0xa23   :  { %1710 = vmatpush.msrb.mxu3 %v1634_v25  ;;  %1763 = vmatpush.msra.mxu1 %v975_v40 }
 0xa25   :  { %1711 = vmatpush.msrb.mxu3 %v1632_v34  ;;  %1764 = vmatpush.msra.mxu1 %v974_v53 }
 0xa27   :  { %1712 = vmatpush.msrb.mxu3 %v1630_v44  ;;  %1765 = vmatpush.msra.mxu1 %v973_v19 }
 0xa28   :  { %1927 = vmatmul.msk.f32.gmra.mxu1 %vm1031_vm5, %v1398_v5 }
 0xa29   :  { %1713 = vmatpush.msrb.mxu3 %v1628_v58  ;;  %1766 = vmatpush.msra.mxu1 %v972_v10 }
 0xa2b   :  { %1714 = vmatpush.msrb.mxu3 %v1626_v59  ;;  %1767 = vmatpush.msra.mxu1 %v971_v27 }
 0xa2d   :  { %1715 = vmatpush.msrb.mxu3 %v1624_v20  ;;  %1768 = vmatpush.msra.mxu1 %v970_v18 }
 0xa2f   :  { %1716 = vmatpush.msrb.mxu3 %v1622_v4  ;;  %1769 = vmatpush.msra.mxu1 %v969_v15 }
 0xa31   :  { %1717 = vmatpush.msrb.mxu3 %v1620_v37 }
 0xa33   :  { %1718 = vmatpush.msrb.mxu3 %v1618_v3 }
 0xa35   :  { %1719 = vmatpush.msrb.mxu3 %v1616_v45 }
 0xa37   :  { %1720 = vmatpush.msrb.mxu3 %v1614_v38 }
 0xa38   :  { %1721 = vmatmul.f32.vlgmr.msrb.gmra.mxu3 %v3325_v17  ;;  %v968_v17 = vld [vmem:[%s3494_s3 + $0x1c8] sm:$0xff]  ;;  %s2007_s3 = smov 128  }
 0xa39   :  { %1770 = vmatpush.msra.mxu1 %v968_v17  ;;  %1793 = vmatpush.msra.mxu3 %v984_v48 }
 0xa3b   :  { %1771 = vmatpush.msra.mxu1 %v967_v46  ;;  %1794 = vmatpush.msra.mxu3 %v983_v28 }
 0xa3d   :  { %1772 = vmatpush.msra.mxu1 %v966_v26  ;;  %1795 = vmatpush.msra.mxu3 %v982_v55 }
 0xa3f   :  { %1773 = vmatpush.msra.mxu1 %v965_v22  ;;  %1796 = vmatpush.msra.mxu3 %v981_v41 }
 0xa40   :  { %1724 = vmatmul.f32.gmra.mxu3 %v3348_v6 }
 0xa8d   :  { %v1676_v31 = vpop.f32.mrf.mxu1 }
 0xa95   :  { %v1679_v11 = vpop.f32.mrf.mxu1 }
 0xa9b   :  { %v1699_v30 = vpop.f32.mrf.mxu3 }
 0xa9c   :  { %v1700_v1 = vadd.f32 %v1699_v30, %v1676_v31 }
 0xa9d   :  { %v1745_v63 = vpop.f32.mrf.mxu1 }
 0xa9e   :  { %1774 = vmatmul.f32.vlgmr.msra.gmra.mxu1 %v1700_v1 }
 0xaa3   :  { %v1702_v51 = vpop.f32.mrf.mxu3 }
 0xaa4   :  { %v1703_v2 = vadd.f32 %v1702_v51, %v1679_v11 }
 0xaa5   :  { %v1748_v6 = vpop.f32.mrf.mxu1 }
 0xaa6   :  { %1777 = vmatmul.f32.gmra.mxu1 %v1703_v2 }
 0xabb   :  { %v1722_v21 = vpop.f32.mrf.mxu3 }
 0xabc   :  { %v1746_v29 = vadd.f32 %v1745_v63, %v1722_v21 }
 0xabe   :  { %1928 = vmatmul.msk.f32.vlgmr.msra.gmra.mxu3 %vm1031_vm5, %v1746_v29 }
 0xac3   :  { %v1725_v42 = vpop.f32.mrf.mxu3 }
 0xac4   :  { %v1749_v47 = vadd.f32 %v1748_v6, %v1725_v42 }
 0xac6   :  { %1929 = vmatmul.msk.f32.gmra.mxu3 %vm1031_vm5, %v1749_v47 }
 0xb1b   :  { %v1775_v24 = vpop.f32.mrf.mxu1 }
 0xb1c   :  { %v1776_v16 = vadd.f32 %v1939_v0, %v1775_v24 }
 0xb23   :  { %v1778_v8 = vpop.f32.mrf.mxu1 }
 0xb24   :  { %v1779_v57 = vadd.f32 %v1939_v0, %v1778_v8 }
 0xb41   :  { %v1798_v12 = vpop.f32.mrf.mxu3 }
 0xb42   :  { %v1799_v13 = vadd.f32 %v1798_v12, %v1776_v16 }
 0xb44   :  { %v1804_v5 = vadd.f32 %v1799_v13, %v775_v50 }
 0xb46   :  { %1806 = vst.msk [vmem:[#allocation2] sm:$0xff] %vm87_vm0, %v1804_v5 }
 0xb49   :  { %v1801_v61 = vpop.f32.mrf.mxu3 }
 0xb4a   :  { %v1802_v25 = vadd.f32 %v1801_v61, %v1779_v57 }
 0xb4c   :  { %v1805_v56 = vadd.f32 %v1802_v25, %v778_v49 }
 0xb4e   :  { %1807 = vst.msk [vmem:[#allocation2 + $0x8] sm:$0xff] %vm87_vm0, %v1805_v56 }
 0xb4f   :  { %1820 = dma.vmem_to_hbm [thread:$0]  %s1813_s30, 256, %s1815_s8, [#allocation3], %s2007_s3, %s2007_s3, %s2008_s9  }
 0xb50   :  { %2004 = dma.done.wait [#allocation3], 256  }
 0xb51   :  { %2005 = vsyncadd [#allocation3], 4294967040 }
 0xb52   :  { %1825 = vsyncpa [#allocation3], 1 }

</bundles_post_ra>
